<compile_context>
chip_gen: v6e
topology: v6e:2x2x1
jax: 0.10.0
libtpu: 0.0.40
codegen_flags: <defaults>
</compile_context>

<pallas_src>
import jax
import jax.numpy as jnp
from jax.experimental import pallas as pl
from jax.experimental.pallas import tpu as pltpu

VMEM = pl.BlockSpec(memory_space=pltpu.MemorySpace.VMEM)


# ---------------------------------------------------------------------------
# Small single-shot kernels (used once per forward, outside any time loop)
# ---------------------------------------------------------------------------
def _linear_kernel(x_ref, w_ref, b_ref, o_ref):
    o_ref[...] = (
        jnp.dot(x_ref[...], w_ref[...], preferred_element_type=jnp.float32)
        + b_ref[...]
    )


def linear(x, w, b):
    """x: (M, K), w: (K, N), b: (N,) -> (M, N)  (torch Linear, W stored transposed)."""
    m, _ = x.shape
    n = w.shape[1]
    return pl.pallas_call(
        _linear_kernel,
        out_shape=jax.ShapeDtypeStruct((m, n), jnp.float32),
        in_specs=[VMEM, VMEM, VMEM],
        out_specs=VMEM,
    )(x, w, b.reshape(1, n))


def _gcn_kernel(a_ref, x_ref, w_ref, b_ref, o_ref):
    xw = jnp.dot(x_ref[...], w_ref[...], preferred_element_type=jnp.float32)
    o_ref[...] = (
        jnp.dot(a_ref[...], xw, preferred_element_type=jnp.float32) + b_ref[...]
    )


def gcn_conv(a_norm, x, w, b):
    """Fused GCNConv: A_norm @ (X @ W) + b in a single kernel."""
    n_nodes = x.shape[0]
    e = w.shape[1]
    return pl.pallas_call(
        _gcn_kernel,
        out_shape=jax.ShapeDtypeStruct((n_nodes, e), jnp.float32),
        in_specs=[VMEM] * 4,
        out_specs=VMEM,
    )(a_norm, x, w, b.reshape(1, e))


def _pool_kernel(x_ref, oh_ref, cnt_ref, mean_ref, max_ref):
    x = x_ref[...]        # (N, E) node features
    oh = oh_ref[...]      # (B, N) one-hot graph assignment
    cnt = jnp.maximum(cnt_ref[...], 1.0)   # guard empty graphs
    mean_ref[...] = jnp.dot(oh, x, preferred_element_type=jnp.float32) / cnt
    masked = jnp.where(oh[:, :, None] > 0.0, x[None, :, :], -1e30)
    max_ref[...] = jnp.max(masked, axis=1)


def global_pools(x, onehot, counts):
    """global_mean_pool + global_max_pool over batch assignment (one kernel)."""
    b = onehot.shape[0]
    e = x.shape[1]
    return pl.pallas_call(
        _pool_kernel,
        out_shape=(
            jax.ShapeDtypeStruct((b, e), jnp.float32),
            jax.ShapeDtypeStruct((b, e), jnp.float32),
        ),
        in_specs=[VMEM] * 3,
        out_specs=(VMEM, VMEM),
    )(x, onehot, counts)


# ---------------------------------------------------------------------------
# Fused GRU over the whole sequence: grid=(S,), hidden carried in VMEM scratch,
# Whh/bhh resident.  Input projection gi = x @ Wih + bih is hoisted outside.
# ---------------------------------------------------------------------------
def _gru_seq_kernel(gi_ref, whh_ref, bhh_ref, out_ref, h_ref):
    t = pl.program_id(0)

    @pl.when(t == 0)
    def _():
        h_ref[...] = jnp.zeros_like(h_ref)

    h = h_ref[...]                                   # (B, H)
    gi = gi_ref[0]                                   # (B, 3H) precomputed
    gh = (
        jnp.dot(h, whh_ref[...], preferred_element_type=jnp.float32)
        + bhh_ref[...]
    )
    hdim = h.shape[1]
    r = jax.nn.sigmoid(gi[:, :hdim] + gh[:, :hdim])
    z = jax.nn.sigmoid(gi[:, hdim:2 * hdim] + gh[:, hdim:2 * hdim])
    n = jnp.tanh(gi[:, 2 * hdim:] + r * gh[:, 2 * hdim:])
    h_new = (1.0 - z) * n + z * h
    h_ref[...] = h_new
    out_ref[0] = h_new


def fused_gru(gi, whh, bhh):
    """gi: (S, B, 3H) precomputed input gates -> all hidden states (S, B, H)."""
    s, b, h3 = gi.shape
    h = h3 // 3
    return pl.pallas_call(
        _gru_seq_kernel,
        out_shape=jax.ShapeDtypeStruct((s, b, h), jnp.float32),
        grid_spec=pltpu.PrefetchScalarGridSpec(
            num_scalar_prefetch=0,
            grid=(s,),
            in_specs=[
                pl.BlockSpec((1, b, h3), lambda t: (t, 0, 0)),   # gi[t]
                pl.BlockSpec((h, h3), lambda t: (0, 0)),         # Whh (resident)
                pl.BlockSpec((1, h3), lambda t: (0, 0)),         # bhh (resident)
            ],
            out_specs=pl.BlockSpec((1, b, h), lambda t: (t, 0, 0)),
            scratch_shapes=[pltpu.VMEM((b, h), jnp.float32)],
        ),
        compiler_params=pltpu.CompilerParams(dimension_semantics=("arbitrary",)),
    )(gi, whh, bhh.reshape(1, -1))


# ---------------------------------------------------------------------------
# Fused decoder: one pallas_call over the whole target sequence.
# Per step t: 2x additive attention (hidden-independent part precomputed),
# GRU cell (embedding projection precomputed), fc1.  Hidden lives in scratch.
# ---------------------------------------------------------------------------
def _decoder_kernel(h0_ref, gie_ref, seq_s_ref, seq_sw_ref, wq_s_ref,
                    ast_s_ref, ast_sw_ref, wq_a_ref,
                    wih_cs_ref, wih_ca_ref, whh_ref, bhh_ref,
                    fc1w_ref, fc1b_ref, out_ref, h_ref):
    t = pl.program_id(0)

    @pl.when(t == 0)
    def _():
        h_ref[...] = h0_ref[...]

    hidden = h_ref[...]                               # (B, 2H)

    def attend(states_ref, sw_ref, wq_ref):
        s = states_ref[...]                           # (S, B, EH)
        hw = jnp.dot(hidden, wq_ref[...],
                     preferred_element_type=jnp.float32)          # (B, 1)
        # sw already contains the hidden-independent projection + bias.
        energy = jnp.maximum(sw_ref[...] + hw.reshape(1, -1), 0.0)  # (S, B)
        a = jax.nn.softmax(energy, axis=0)
        return jnp.sum(a[:, :, None] * s, axis=0)     # (B, EH)

    ctx_seq = attend(seq_s_ref, seq_sw_ref, wq_s_ref)
    ctx_ast = attend(ast_s_ref, ast_sw_ref, wq_a_ref)

    # GRU input gates: split-weight form of [ctx_seq; ctx_ast; emb] @ Wih + bih
    # (embedding part + bih precomputed outside -> gie_ref).
    gi = (
        jnp.dot(ctx_seq, wih_cs_ref[...], preferred_element_type=jnp.float32)
        + jnp.dot(ctx_ast, wih_ca_ref[...], preferred_element_type=jnp.float32)
        + gie_ref[0]
    )
    gh = (
        jnp.dot(hidden, whh_ref[...], preferred_element_type=jnp.float32)
        + bhh_ref[...]
    )
    h2 = hidden.shape[1]
    r = jax.nn.sigmoid(gi[:, :h2] + gh[:, :h2])
    z = jax.nn.sigmoid(gi[:, h2:2 * h2] + gh[:, h2:2 * h2])
    n = jnp.tanh(gi[:, 2 * h2:] + r * gh[:, 2 * h2:])
    h_new = (1.0 - z) * n + z * hidden
    h_ref[...] = h_new

    out_ref[0] = (
        jnp.dot(h_new, fc1w_ref[...], preferred_element_type=jnp.float32)
        + fc1b_ref[...]
    )


def fused_decoder(h0, gi_emb, seq_states, sw_seq, wq_seq,
                  ast_states, sw_ast, wq_ast,
                  wih_cs, wih_ca, whh, bhh, fc1_w, fc1_b):
    tm1, b, h6 = gi_emb.shape
    h2 = h0.shape[1]
    v = fc1_w.shape[1]
    s_seq, _, h = seq_states.shape
    s_ast = ast_states.shape[0]

    def full(shape):
        return pl.BlockSpec(shape, lambda t, _s=shape: (0,) * len(_s))

    return pl.pallas_call(
        _decoder_kernel,
        out_shape=jax.ShapeDtypeStruct((tm1, b, v), jnp.float32),
        grid_spec=pltpu.PrefetchScalarGridSpec(
            num_scalar_prefetch=0,
            grid=(tm1,),
            in_specs=[
                full((b, h2)),                                   # h0
                pl.BlockSpec((1, b, h6), lambda t: (t, 0, 0)),   # gi_emb[t]
                full((s_seq, b, h)),                             # seq states (resident)
                full((s_seq, b)),                                # seq sw (+bias)
                full((h2, 1)),                                   # seq attn w_hidden
                full((s_ast, b, h)),                             # ast states (resident)
                full((s_ast, b)),                                # ast sw (+bias)
                full((h2, 1)),                                   # ast attn w_hidden
                full((h, h6)),                                   # Wih (ctx_seq rows)
                full((h, h6)),                                   # Wih (ctx_ast rows)
                full((h2, h6)),                                  # Whh
                full((1, h6)),                                   # bhh
                full((h2, v)),                                   # fc1 W
                full((1, v)),                                    # fc1 b
            ],
            out_specs=pl.BlockSpec((1, b, v), lambda t: (t, 0, 0)),
            scratch_shapes=[pltpu.VMEM((b, h2), jnp.float32)],
        ),
        compiler_params=pltpu.CompilerParams(dimension_semantics=("arbitrary",)),
    )(h0, gi_emb, seq_states, sw_seq, wq_seq, ast_states, sw_ast, wq_ast,
      wih_cs, wih_ca, whh, bhh.reshape(1, -1), fc1_w, fc1_b.reshape(1, -1))


# ---------------------------------------------------------------------------
# Parameters (deterministic synthetic init — no checkpoint / GloVe load)
# ---------------------------------------------------------------------------
def init_params(key, src_vocab, e_src, md_vocab, e_md, h):
    def nrm(k, shape, scale=0.1):
        return scale * jax.random.normal(k, shape, jnp.float32)

    ks = jax.random.split(key, 24)
    p = {}
    p["src_emb"] = nrm(ks[0], (src_vocab, e_src))
    p["md_emb"] = nrm(ks[1], (md_vocab, e_md))      # use_glove=False path
    # CodeSequenceEncoder GRU (in=e_src, hidden=h)  (weights stored transposed)
    p["seq_gru"] = (nrm(ks[2], (e_src, 3 * h)), nrm(ks[3], (h, 3 * h)),
                    nrm(ks[4], (3 * h,)), nrm(ks[5], (3 * h,)))
    p["fc_hidden_w"] = nrm(ks[6], (h, h))
    p["fc_hidden_b"] = nrm(ks[7], (h,))
    # GCNConv(e_src, e_src)
    p["gcn_w"] = nrm(ks[8], (e_src, e_src))
    p["gcn_b"] = nrm(ks[9], (e_src,))
    # CodeASTEncoder GRU (in=e_src, hidden=h)
    p["ast_gru"] = (nrm(ks[10], (e_src, 3 * h)), nrm(ks[11], (h, 3 * h)),
                    nrm(ks[12], (3 * h,)), nrm(ks[13], (3 * h,)))
    # Decoder GRU (in=2h+e_md, hidden=2h)
    dec_in = 2 * h + e_md
    p["dec_gru"] = (nrm(ks[14], (dec_in, 6 * h)), nrm(ks[15], (2 * h, 6 * h)),
                    nrm(ks[16], (6 * h,)), nrm(ks[17], (6 * h,)))
    # BeforeRNNAttention(h, 2h): energy Linear(2h + h, 1)
    p["attn_seq_w"] = nrm(ks[18], (3 * h, 1))
    p["attn_seq_b"] = nrm(ks[19], (1,))
    p["attn_ast_w"] = nrm(ks[20], (3 * h, 1))
    p["attn_ast_b"] = nrm(ks[21], (1,))
    # fc1: Linear(2h, md_vocab)
    p["fc1_w"] = nrm(ks[22], (2 * h, md_vocab))
    p["fc1_b"] = nrm(ks[23], (md_vocab,))
    return p


# ---------------------------------------------------------------------------
# AConvGNN forward
# ---------------------------------------------------------------------------
def a_conv_gnn_forward(params, source, ast_nodes, ast_edges, batch_index,
                       target, hidden_size, md_vocab):
    S, B = source.shape
    T = target.shape[0]
    H = hidden_size

    # ---- CodeSequenceEncoder ----
    src_embed = jnp.take(params["src_emb"], source, axis=0)            # (S, B, E_src)
    e_src = src_embed.shape[2]
    wih_s, whh_s, bih_s, bhh_s = params["seq_gru"]
    # hoist input projection out of the recurrence (one big matmul)
    gi_seq = linear(src_embed.reshape(S * B, e_src), wih_s, bih_s).reshape(S, B, 3 * H)
    seq_states = fused_gru(gi_seq, whh_s, bhh_s)                       # (S, B, H)
    seq_h = seq_states[-1]                                             # (B, H)
    # reshape_hidden_for_linear (num_layers=1) + fc_hidden
    seq_hidden = linear(seq_h, params["fc_hidden_w"], params["fc_hidden_b"])

    # ---- CodeASTEncoder ----
    N = ast_nodes.shape[0]
    v_embed = jnp.take(params["src_emb"], ast_nodes[:, 0], axis=0)      # (N, E_src)
    # GCNConv: dense symmetric-normalized adjacency with self loops (glue);
    # both matmuls fused in one Pallas kernel.
    A = jnp.zeros((N, N), jnp.float32).at[ast_edges[1], ast_edges[0]].add(1.0)
    A = A + jnp.eye(N, dtype=jnp.float32)
    deg = jnp.sum(A, axis=1)
    dinv = 1.0 / jnp.sqrt(deg)
    A_norm = A * dinv[:, None] * dinv[None, :]
    gcn_out = gcn_conv(A_norm, v_embed, params["gcn_w"], params["gcn_b"])

    onehot = (batch_index[None, :] == jnp.arange(B)[:, None]).astype(jnp.float32)
    counts = jnp.sum(onehot, axis=1, keepdims=True)
    mean_pool, max_pool = global_pools(gcn_out, onehot, counts)         # (B, E_src) x2
    ast_seq = jnp.stack([mean_pool, max_pool], axis=0)                  # (2, B, E_src)
    wih_a, whh_a, bih_a, bhh_a = params["ast_gru"]
    gi_ast = linear(ast_seq.reshape(2 * B, e_src), wih_a, bih_a).reshape(2, B, 3 * H)
    ast_states = fused_gru(gi_ast, whh_a, bhh_a)                        # (2, B, H)
    ast_hidden = ast_states[-1]                                         # (B, H)

    # ---- DocumentDecoder (fused over all T-1 steps) ----
    hidden0 = jnp.concatenate([seq_hidden, ast_hidden], axis=1)         # (B, 2H)
    wih_d, whh_d, bih_d, bhh_d = params["dec_gru"]
    e_md = params["md_emb"].shape[1]
    wih_cs, wih_ca, wih_e = wih_d[:H], wih_d[H:2 * H], wih_d[2 * H:]

    # TODO(synk): reference uses Python random.random() for teacher forcing;
    # replaced by deterministic teacher forcing (always ground-truth token),
    # which allows hoisting the embedding-side GRU projection for all steps.
    tgt_emb = jnp.take(params["md_emb"], target[:T - 1], axis=0)        # (T-1, B, E_md)
    gi_emb = linear(tgt_emb.reshape((T - 1) * B, e_md), wih_e, bih_d
                    ).reshape(T - 1, B, 6 * H)

    # hidden-independent attention term (states @ w_state + bias), hoisted.
    sw_seq = linear(seq_states.reshape(S * B, H),
                    params["attn_seq_w"][2 * H:], params["attn_seq_b"]).reshape(S, B)
    sw_ast = linear(ast_states.reshape(2 * B, H),
                    params["attn_ast_w"][2 * H:], params["attn_ast_b"]).reshape(2, B)

    preds = fused_decoder(hidden0, gi_emb, seq_states, sw_seq,
                          params["attn_seq_w"][:2 * H],
                          ast_states, sw_ast, params["attn_ast_w"][:2 * H],
                          wih_cs, wih_ca, whh_d, bhh_d,
                          params["fc1_w"], params["fc1_b"])             # (T-1, B, V)

    outputs = jnp.concatenate(
        [jnp.zeros((1, B, md_vocab), jnp.float32), preds], axis=0)      # outputs[0]=0
    return outputs


# ---------------------------------------------------------------------------
if __name__ == "__main__":
    key = jax.random.PRNGKey(0)
    SRC_V, E_SRC, MD_V, E_MD, H = 50, 16, 40, 16, 32
    S, B, T, N, NE = 8, 2, 6, 10, 20

    kp, k1, k2, k3, k4 = jax.random.split(key, 5)
    params = init_params(kp, SRC_V, E_SRC, MD_V, E_MD, H)

    source = jax.random.randint(k1, (S, B), 0, SRC_V)                    # (seq, batch)
    source_ast_nodes = jax.random.randint(k2, (N, 1), 0, SRC_V)          # (nodes, 1)
    source_ast_edges = jax.random.randint(k3, (2, NE), 0, N)             # (2, num_edges)
    batch_index = jnp.concatenate(
        [jnp.zeros((N // 2,), jnp.int32), jnp.ones((N - N // 2,), jnp.int32)])
    target = jax.random.randint(k4, (T, B), 0, MD_V)                     # (seq, batch)

    forward = jax.jit(a_conv_gnn_forward, static_argnums=(6, 7))
    out = forward(params, source, source_ast_nodes, source_ast_edges,
                  batch_index, target, H, MD_V)
    jax.block_until_ready(out)
    assert out.shape == (T, B, MD_V), out.shape
    print("KERNEL_OK")
</pallas_src>

<mosaic_0001>
module attributes {stable_mosaic.version = 11 : i64} {
  func.func @_linear_kernel(%arg0: memref<10x16xf32, #tpu.memory_space<vmem>>, %arg1: memref<16x192xf32, #tpu.memory_space<vmem>>, %arg2: memref<1x192xf32, #tpu.memory_space<vmem>>, %arg3: memref<10x192xf32, #tpu.memory_space<vmem>>) attributes {dimension_semantics = [], scalar_prefetch = 0 : i64, scratch_operands = 0 : i64, tpu.core_type = #tpu.core_type<tc>} {
    %c0 = arith.constant 0 : index
    %c0_0 = arith.constant 0 : index
    %0 = vector.load %arg0[%c0, %c0_0] : memref<10x16xf32, #tpu.memory_space<vmem>>, vector<10x16xf32>
    %c0_1 = arith.constant 0 : index
    %c0_2 = arith.constant 0 : index
    %1 = vector.load %arg1[%c0_1, %c0_2] : memref<16x192xf32, #tpu.memory_space<vmem>>, vector<16x192xf32>
    %cst = arith.constant dense<0.000000e+00> : vector<10x192xf32>
    %2 = tpu.matmul %0, %1, %cst {dimension_numbers = #tpu.dot_dimension_numbers<[1], [0], [0], [1], [0, 0, 1, 1], [], []>} : vector<10x16xf32>, vector<16x192xf32>, vector<10x192xf32> -> vector<10x192xf32>
    %c0_3 = arith.constant 0 : index
    %c0_4 = arith.constant 0 : index
    %3 = vector.load %arg2[%c0_3, %c0_4] : memref<1x192xf32, #tpu.memory_space<vmem>>, vector<1x192xf32>
    %4 = vector.broadcast %3 : vector<1x192xf32> to vector<10x192xf32>
    %5 = arith.addf %2, %4 : vector<10x192xf32>
    %c0_5 = arith.constant 0 : index
    %c0_6 = arith.constant 0 : index
    %6 = vector.load %arg3[%c0_5, %c0_6] : memref<10x192xf32, #tpu.memory_space<vmem>>, vector<10x192xf32>
    tpu.vector_store %arg3[%c0_5, %c0_6], %5 {strides = array<i32>} : memref<10x192xf32, #tpu.memory_space<vmem>>, vector<10x192xf32>,
    return
  }
}

module attributes {stable_mosaic.version = 11 : i64} {
  func.func @_gcn_kernel(%arg0: memref<10x10xf32, #tpu.memory_space<vmem>>, %arg1: memref<10x16xf32, #tpu.memory_space<vmem>>, %arg2: memref<16x16xf32, #tpu.memory_space<vmem>>, %arg3: memref<1x16xf32, #tpu.memory_space<vmem>>, %arg4: memref<10x16xf32, #tpu.memory_space<vmem>>) attributes {dimension_semantics = [], scalar_prefetch = 0 : i64, scratch_operands = 0 : i64, tpu.core_type = #tpu.core_type<tc>} {
    %c0 = arith.constant 0 : index
    %c0_0 = arith.constant 0 : index
    %0 = vector.load %arg1[%c0, %c0_0] : memref<10x16xf32, #tpu.memory_space<vmem>>, vector<10x16xf32>
    %c0_1 = arith.constant 0 : index
    %c0_2 = arith.constant 0 : index
    %1 = vector.load %arg2[%c0_1, %c0_2] : memref<16x16xf32, #tpu.memory_space<vmem>>, vector<16x16xf32>
    %cst = arith.constant dense<0.000000e+00> : vector<10x16xf32>
    %2 = tpu.matmul %0, %1, %cst {dimension_numbers = #tpu.dot_dimension_numbers<[1], [0], [0], [1], [0, 0, 1, 1], [], []>} : vector<10x16xf32>, vector<16x16xf32>, vector<10x16xf32> -> vector<10x16xf32>
    %c0_3 = arith.constant 0 : index
    %c0_4 = arith.constant 0 : index
    %3 = vector.load %arg0[%c0_3, %c0_4] : memref<10x10xf32, #tpu.memory_space<vmem>>, vector<10x10xf32>
    %cst_5 = arith.constant dense<0.000000e+00> : vector<10x16xf32>
    %4 = tpu.matmul %3, %2, %cst_5 {dimension_numbers = #tpu.dot_dimension_numbers<[1], [0], [0], [1], [0, 0, 1, 1], [], []>} : vector<10x10xf32>, vector<10x16xf32>, vector<10x16xf32> -> vector<10x16xf32>
    %c0_6 = arith.constant 0 : index
    %c0_7 = arith.constant 0 : index
    %5 = vector.load %arg3[%c0_6, %c0_7] : memref<1x16xf32, #tpu.memory_space<vmem>>, vector<1x16xf32>
    %6 = vector.broadcast %5 : vector<1x16xf32> to vector<10x16xf32>
    %7 = arith.addf %4, %6 : vector<10x16xf32>
    %c0_8 = arith.constant 0 : index
    %c0_9 = arith.constant 0 : index
    %8 = vector.load %arg4[%c0_8, %c0_9] : memref<10x16xf32, #tpu.memory_space<vmem>>, vector<10x16xf32>
    tpu.vector_store %arg4[%c0_8, %c0_9], %7 {strides = array<i32>} : memref<10x16xf32, #tpu.memory_space<vmem>>, vector<10x16xf32>,
    return
  }
}

module attributes {stable_mosaic.version = 11 : i64} {
  func.func @_pool_kernel(%arg0: memref<10x16xf32, #tpu.memory_space<vmem>>, %arg1: memref<2x10xf32, #tpu.memory_space<vmem>>, %arg2: memref<2x1xf32, #tpu.memory_space<vmem>>, %arg3: memref<2x16xf32, #tpu.memory_space<vmem>>, %arg4: memref<2x16xf32, #tpu.memory_space<vmem>>) attributes {dimension_semantics = [], scalar_prefetch = 0 : i64, scratch_operands = 0 : i64, tpu.core_type = #tpu.core_type<tc>} {
    %c0 = arith.constant 0 : index
    %c0_0 = arith.constant 0 : index
    %0 = vector.load %arg0[%c0, %c0_0] : memref<10x16xf32, #tpu.memory_space<vmem>>, vector<10x16xf32>
    %c0_1 = arith.constant 0 : index
    %c0_2 = arith.constant 0 : index
    %1 = vector.load %arg1[%c0_1, %c0_2] : memref<2x10xf32, #tpu.memory_space<vmem>>, vector<2x10xf32>
    %c0_3 = arith.constant 0 : index
    %c0_4 = arith.constant 0 : index
    %2 = vector.load %arg2[%c0_3, %c0_4] : memref<2x1xf32, #tpu.memory_space<vmem>>, vector<2x1xf32>
    %cst = arith.constant 1.000000e+00 : f32
    %3 = vector.broadcast %cst : f32 to vector<2x1xf32>
    %4 = arith.maximumf %2, %3 : vector<2x1xf32>
    %cst_5 = arith.constant dense<0.000000e+00> : vector<2x16xf32>
    %5 = tpu.matmul %1, %0, %cst_5 {dimension_numbers = #tpu.dot_dimension_numbers<[1], [0], [0], [1], [0, 0, 1, 1], [], []>} : vector<2x10xf32>, vector<10x16xf32>, vector<2x16xf32> -> vector<2x16xf32>
    %6 = vector.broadcast %4 : vector<2x1xf32> to vector<2x16xf32>
    %7 = arith.divf %5, %6 : vector<2x16xf32>
    %c0_6 = arith.constant 0 : index
    %c0_7 = arith.constant 0 : index
    %8 = vector.load %arg3[%c0_6, %c0_7] : memref<2x16xf32, #tpu.memory_space<vmem>>, vector<2x16xf32>
    tpu.vector_store %arg3[%c0_6, %c0_7], %7 {strides = array<i32>} : memref<2x16xf32, #tpu.memory_space<vmem>>, vector<2x16xf32>,
    %9 = vector.shape_cast %1 : vector<2x10xf32> to vector<2x10x1xf32>
    %cst_8 = arith.constant 0.000000e+00 : f32
    %10 = vector.broadcast %cst_8 : f32 to vector<2x10x1xf32>
    %11 = arith.cmpf ogt, %9, %10 : vector<2x10x1xf32>
    %12 = vector.shape_cast %0 : vector<10x16xf32> to vector<1x10x16xf32>
    %cst_9 = arith.constant -1.000000e+30 : f32
    %13 = vector.shape_cast %11 : vector<2x10x1xi1> to vector<2x10x1xi1>
    %14 = vector.broadcast %13 : vector<2x10x1xi1> to vector<2x10x16xi1>
    %15 = vector.shape_cast %12 : vector<1x10x16xf32> to vector<1x10x16xf32>
    %16 = vector.broadcast %15 : vector<1x10x16xf32> to vector<2x10x16xf32>
    %17 = vector.broadcast %cst_9 : f32 to vector<2x10x16xf32>
    %18 = arith.select %14, %16, %17 : vector<2x10x16xi1>, vector<2x10x16xf32>
    %cst_10 = arith.constant dense<0xFF800000> : vector<2x16xf32>
    %19 = vector.multi_reduction <maximumf>, %18, %cst_10 [1] : vector<2x10x16xf32> to vector<2x16xf32>
    %c0_11 = arith.constant 0 : index
    %c0_12 = arith.constant 0 : index
    %20 = vector.load %arg4[%c0_11, %c0_12] : memref<2x16xf32, #tpu.memory_space<vmem>>, vector<2x16xf32>
    tpu.vector_store %arg4[%c0_11, %c0_12], %19 {strides = array<i32>} : memref<2x16xf32, #tpu.memory_space<vmem>>, vector<2x16xf32>,
    return
  }
}

module attributes {stable_mosaic.version = 11 : i64} {
  func.func @_linear_kernel(%arg0: memref<4x32xf32, #tpu.memory_space<vmem>>, %arg1: memref<32x1xf32, #tpu.memory_space<vmem>>, %arg2: memref<1x1xf32, #tpu.memory_space<vmem>>, %arg3: memref<4x1xf32, #tpu.memory_space<vmem>>) attributes {dimension_semantics = [], scalar_prefetch = 0 : i64, scratch_operands = 0 : i64, tpu.core_type = #tpu.core_type<tc>} {
    %c0 = arith.constant 0 : index
    %c0_0 = arith.constant 0 : index
    %0 = vector.load %arg0[%c0, %c0_0] : memref<4x32xf32, #tpu.memory_space<vmem>>, vector<4x32xf32>
    %c0_1 = arith.constant 0 : index
    %c0_2 = arith.constant 0 : index
    %1 = vector.load %arg1[%c0_1, %c0_2] : memref<32x1xf32, #tpu.memory_space<vmem>>, vector<32x1xf32>
    %cst = arith.constant dense<0.000000e+00> : vector<4x1xf32>
    %2 = tpu.matmul %0, %1, %cst {dimension_numbers = #tpu.dot_dimension_numbers<[1], [0], [0], [1], [0, 0, 1, 1], [], []>} : vector<4x32xf32>, vector<32x1xf32>, vector<4x1xf32> -> vector<4x1xf32>
    %c0_3 = arith.constant 0 : index
    %c0_4 = arith.constant 0 : index
    %3 = vector.load %arg2[%c0_3, %c0_4] : memref<1x1xf32, #tpu.memory_space<vmem>>, vector<1x1xf32>
    %4 = vector.broadcast %3 : vector<1x1xf32> to vector<4x1xf32>
    %5 = arith.addf %2, %4 : vector<4x1xf32>
    %c0_5 = arith.constant 0 : index
    %c0_6 = arith.constant 0 : index
    %6 = vector.load %arg3[%c0_5, %c0_6] : memref<4x1xf32, #tpu.memory_space<vmem>>, vector<4x1xf32>
    tpu.vector_store %arg3[%c0_5, %c0_6], %5 {strides = array<i32>} : memref<4x1xf32, #tpu.memory_space<vmem>>, vector<4x1xf32>,
    return
  }
}

module attributes {stable_mosaic.version = 11 : i64} {
  func.func @_linear_kernel(%arg0: memref<4x16xf32, #tpu.memory_space<vmem>>, %arg1: memref<16x96xf32, #tpu.memory_space<vmem>>, %arg2: memref<1x96xf32, #tpu.memory_space<vmem>>, %arg3: memref<4x96xf32, #tpu.memory_space<vmem>>) attributes {dimension_semantics = [], scalar_prefetch = 0 : i64, scratch_operands = 0 : i64, tpu.core_type = #tpu.core_type<tc>} {
    %c0 = arith.constant 0 : index
    %c0_0 = arith.constant 0 : index
    %0 = vector.load %arg0[%c0, %c0_0] : memref<4x16xf32, #tpu.memory_space<vmem>>, vector<4x16xf32>
    %c0_1 = arith.constant 0 : index
    %c0_2 = arith.constant 0 : index
    %1 = vector.load %arg1[%c0_1, %c0_2] : memref<16x96xf32, #tpu.memory_space<vmem>>, vector<16x96xf32>
    %cst = arith.constant dense<0.000000e+00> : vector<4x96xf32>
    %2 = tpu.matmul %0, %1, %cst {dimension_numbers = #tpu.dot_dimension_numbers<[1], [0], [0], [1], [0, 0, 1, 1], [], []>} : vector<4x16xf32>, vector<16x96xf32>, vector<4x96xf32> -> vector<4x96xf32>
    %c0_3 = arith.constant 0 : index
    %c0_4 = arith.constant 0 : index
    %3 = vector.load %arg2[%c0_3, %c0_4] : memref<1x96xf32, #tpu.memory_space<vmem>>, vector<1x96xf32>
    %4 = vector.broadcast %3 : vector<1x96xf32> to vector<4x96xf32>
    %5 = arith.addf %2, %4 : vector<4x96xf32>
    %c0_5 = arith.constant 0 : index
    %c0_6 = arith.constant 0 : index
    %6 = vector.load %arg3[%c0_5, %c0_6] : memref<4x96xf32, #tpu.memory_space<vmem>>, vector<4x96xf32>
    tpu.vector_store %arg3[%c0_5, %c0_6], %5 {strides = array<i32>} : memref<4x96xf32, #tpu.memory_space<vmem>>, vector<4x96xf32>,
    return
  }
}

module attributes {stable_mosaic.version = 11 : i64} {
  func.func @_gru_seq_kernel(%arg0: i32, %arg1: memref<1x2x96xf32, #tpu.memory_space<vmem>>, %arg2: memref<32x96xf32, #tpu.memory_space<vmem>>, %arg3: memref<1x96xf32, #tpu.memory_space<vmem>>, %arg4: memref<1x2x32xf32, #tpu.memory_space<vmem>>, %arg5: memref<2x32xf32, #tpu.memory_space<vmem>>) attributes {dimension_semantics = [#tpu.dimension_semantics<arbitrary>], iteration_bounds = array<i64: 2>, scalar_prefetch = 0 : i64, scratch_operands = 1 : i64, tpu.core_type = #tpu.core_type<tc>, window_params = [{transform_indices = @transform_0, window_bounds = array<i64: 1, 2, 96>}, {pipeline_mode = #tpu.pipeline_mode<synchronous>, transform_indices = @transform_1, window_bounds = array<i64: 32, 96>}, {pipeline_mode = #tpu.pipeline_mode<synchronous>, transform_indices = @transform_2, window_bounds = array<i64: 1, 96>}, {transform_indices = @transform_3, window_bounds = array<i64: 1, 2, 32>}]} {
    %c0_i32 = arith.constant 0 : i32
    %0 = arith.cmpi eq, %arg0, %c0_i32 : i32
    %1 = arith.extui %0 : i1 to i32
    %c0_i32_0 = arith.constant 0 : i32
    %2 = arith.cmpi ne, %1, %c0_i32_0 : i32
    scf.if %2 {
      %cst_17 = arith.constant 0.000000e+00 : f32
      %41 = vector.broadcast %cst_17 : f32 to vector<2x32xf32>
      %c0_18 = arith.constant 0 : index
      %c0_19 = arith.constant 0 : index
      %42 = vector.load %arg5[%c0_18, %c0_19] : memref<2x32xf32, #tpu.memory_space<vmem>>, vector<2x32xf32>
      tpu.vector_store %arg5[%c0_18, %c0_19], %41 {strides = array<i32>} : memref<2x32xf32, #tpu.memory_space<vmem>>, vector<2x32xf32>,
    } else {
    }
    %c0 = arith.constant 0 : index
    %c0_1 = arith.constant 0 : index
    %3 = vector.load %arg5[%c0, %c0_1] : memref<2x32xf32, #tpu.memory_space<vmem>>, vector<2x32xf32>
    %c0_2 = arith.constant 0 : index
    %c0_3 = arith.constant 0 : index
    %c0_4 = arith.constant 0 : index
    %4 = vector.load %arg1[%c0_2, %c0_3, %c0_4] : memref<1x2x96xf32, #tpu.memory_space<vmem>>, vector<1x2x96xf32>
    %5 = vector.shape_cast %4 : vector<1x2x96xf32> to vector<2x96xf32>
    %c0_5 = arith.constant 0 : index
    %c0_6 = arith.constant 0 : index
    %6 = vector.load %arg2[%c0_5, %c0_6] : memref<32x96xf32, #tpu.memory_space<vmem>>, vector<32x96xf32>
    %cst = arith.constant dense<0.000000e+00> : vector<2x96xf32>
    %7 = tpu.matmul %3, %6, %cst {dimension_numbers = #tpu.dot_dimension_numbers<[1], [0], [0], [1], [0, 0, 1, 1], [], []>} : vector<2x32xf32>, vector<32x96xf32>, vector<2x96xf32> -> vector<2x96xf32>
    %c0_7 = arith.constant 0 : index
    %c0_8 = arith.constant 0 : index
    %8 = vector.load %arg3[%c0_7, %c0_8] : memref<1x96xf32, #tpu.memory_space<vmem>>, vector<1x96xf32>
    %9 = vector.broadcast %8 : vector<1x96xf32> to vector<2x96xf32>
    %10 = arith.addf %7, %9 : vector<2x96xf32>
    %11 = vector.extract_strided_slice %5 {offsets = [0, 0], sizes = [2, 32], strides = [1, 1]} : vector<2x96xf32> to vector<2x32xf32>
    %12 = vector.extract_strided_slice %10 {offsets = [0, 0], sizes = [2, 32], strides = [1, 1]} : vector<2x96xf32> to vector<2x32xf32>
    %13 = arith.addf %11, %12 : vector<2x32xf32>
    %14 = arith.negf %13 : vector<2x32xf32>
    %15 = math.exp %14 : vector<2x32xf32>
    %cst_9 = arith.constant 1.000000e+00 : f32
    %16 = vector.broadcast %cst_9 : f32 to vector<2x32xf32>
    %17 = arith.addf %16, %15 : vector<2x32xf32>
    %18 = arith.divf %16, %17 : vector<2x32xf32>
    %19 = vector.extract_strided_slice %5 {offsets = [0, 32], sizes = [2, 32], strides = [1, 1]} : vector<2x96xf32> to vector<2x32xf32>
    %20 = vector.extract_strided_slice %10 {offsets = [0, 32], sizes = [2, 32], strides = [1, 1]} : vector<2x96xf32> to vector<2x32xf32>
    %21 = arith.addf %19, %20 : vector<2x32xf32>
    %22 = arith.negf %21 : vector<2x32xf32>
    %23 = math.exp %22 : vector<2x32xf32>
    %cst_10 = arith.constant 1.000000e+00 : f32
    %24 = vector.broadcast %cst_10 : f32 to vector<2x32xf32>
    %25 = arith.addf %24, %23 : vector<2x32xf32>
    %26 = arith.divf %24, %25 : vector<2x32xf32>
    %27 = vector.extract_strided_slice %5 {offsets = [0, 64], sizes = [2, 32], strides = [1, 1]} : vector<2x96xf32> to vector<2x32xf32>
    %28 = vector.extract_strided_slice %10 {offsets = [0, 64], sizes = [2, 32], strides = [1, 1]} : vector<2x96xf32> to vector<2x32xf32>
    %29 = arith.mulf %18, %28 : vector<2x32xf32>
    %30 = arith.addf %27, %29 : vector<2x32xf32>
    %31 = math.tanh %30 : vector<2x32xf32>
    %cst_11 = arith.constant 1.000000e+00 : f32
    %32 = vector.broadcast %cst_11 : f32 to vector<2x32xf32>
    %33 = arith.subf %32, %26 : vector<2x32xf32>
    %34 = arith.mulf %33, %31 : vector<2x32xf32>
    %35 = arith.mulf %26, %3 : vector<2x32xf32>
    %36 = arith.addf %34, %35 : vector<2x32xf32>
    %c0_12 = arith.constant 0 : index
    %c0_13 = arith.constant 0 : index
    %37 = vector.load %arg5[%c0_12, %c0_13] : memref<2x32xf32, #tpu.memory_space<vmem>>, vector<2x32xf32>
    tpu.vector_store %arg5[%c0_12, %c0_13], %36 {strides = array<i32>} : memref<2x32xf32, #tpu.memory_space<vmem>>, vector<2x32xf32>,
    %c0_14 = arith.constant 0 : index
    %c0_15 = arith.constant 0 : index
    %c0_16 = arith.constant 0 : index
    %38 = vector.load %arg4[%c0_14, %c0_15, %c0_16] : memref<1x2x32xf32, #tpu.memory_space<vmem>>, vector<1x2x32xf32>
    %39 = vector.shape_cast %38 : vector<1x2x32xf32> to vector<2x32xf32>
    %40 = vector.shape_cast %36 : vector<2x32xf32> to vector<1x2x32xf32>
    tpu.vector_store %arg4[%c0_14, %c0_15, %c0_16], %40 {strides = array<i32>} : memref<1x2x32xf32, #tpu.memory_space<vmem>>, vector<1x2x32xf32>,
    return
  }
  func.func @transform_0(%arg0: i32) -> (i32, i32, i32) {
    %c0_i32 = arith.constant 0 : i32
    %c0_i32_0 = arith.constant 0 : i32
    %c0_i32_1 = arith.constant 0 : i32
    return %arg0, %c0_i32, %c0_i32_0 : i32, i32, i32
  }
  func.func @transform_1(%arg0: i32) -> (i32, i32) {
    %c0_i32 = arith.constant 0 : i32
    %c0_i32_0 = arith.constant 0 : i32
    %c0_i32_1 = arith.constant 0 : i32
    return %c0_i32, %c0_i32_0 : i32, i32
  }
  func.func @transform_2(%arg0: i32) -> (i32, i32) {
    %c0_i32 = arith.constant 0 : i32
    %c0_i32_0 = arith.constant 0 : i32
    %c0_i32_1 = arith.constant 0 : i32
    return %c0_i32, %c0_i32_0 : i32, i32
  }
  func.func @transform_3(%arg0: i32) -> (i32, i32, i32) {
    %c0_i32 = arith.constant 0 : i32
    %c0_i32_0 = arith.constant 0 : i32
    %c0_i32_1 = arith.constant 0 : i32
    return %arg0, %c0_i32, %c0_i32_0 : i32, i32, i32
  }
}

module attributes {stable_mosaic.version = 11 : i64} {
  func.func @_linear_kernel(%arg0: memref<16x16xf32, #tpu.memory_space<vmem>>, %arg1: memref<16x96xf32, #tpu.memory_space<vmem>>, %arg2: memref<1x96xf32, #tpu.memory_space<vmem>>, %arg3: memref<16x96xf32, #tpu.memory_space<vmem>>) attributes {dimension_semantics = [], scalar_prefetch = 0 : i64, scratch_operands = 0 : i64, tpu.core_type = #tpu.core_type<tc>} {
    %c0 = arith.constant 0 : index
    %c0_0 = arith.constant 0 : index
    %0 = vector.load %arg0[%c0, %c0_0] : memref<16x16xf32, #tpu.memory_space<vmem>>, vector<16x16xf32>
    %c0_1 = arith.constant 0 : index
    %c0_2 = arith.constant 0 : index
    %1 = vector.load %arg1[%c0_1, %c0_2] : memref<16x96xf32, #tpu.memory_space<vmem>>, vector<16x96xf32>
    %cst = arith.constant dense<0.000000e+00> : vector<16x96xf32>
    %2 = tpu.matmul %0, %1, %cst {dimension_numbers = #tpu.dot_dimension_numbers<[1], [0], [0], [1], [0, 0, 1, 1], [], []>} : vector<16x16xf32>, vector<16x96xf32>, vector<16x96xf32> -> vector<16x96xf32>
    %c0_3 = arith.constant 0 : index
    %c0_4 = arith.constant 0 : index
    %3 = vector.load %arg2[%c0_3, %c0_4] : memref<1x96xf32, #tpu.memory_space<vmem>>, vector<1x96xf32>
    %4 = vector.broadcast %3 : vector<1x96xf32> to vector<16x96xf32>
    %5 = arith.addf %2, %4 : vector<16x96xf32>
    %c0_5 = arith.constant 0 : index
    %c0_6 = arith.constant 0 : index
    %6 = vector.load %arg3[%c0_5, %c0_6] : memref<16x96xf32, #tpu.memory_space<vmem>>, vector<16x96xf32>
    tpu.vector_store %arg3[%c0_5, %c0_6], %5 {strides = array<i32>} : memref<16x96xf32, #tpu.memory_space<vmem>>, vector<16x96xf32>,
    return
  }
}

module attributes {stable_mosaic.version = 11 : i64} {
  func.func @_linear_kernel(%arg0: memref<16x32xf32, #tpu.memory_space<vmem>>, %arg1: memref<32x1xf32, #tpu.memory_space<vmem>>, %arg2: memref<1x1xf32, #tpu.memory_space<vmem>>, %arg3: memref<16x1xf32, #tpu.memory_space<vmem>>) attributes {dimension_semantics = [], scalar_prefetch = 0 : i64, scratch_operands = 0 : i64, tpu.core_type = #tpu.core_type<tc>} {
    %c0 = arith.constant 0 : index
    %c0_0 = arith.constant 0 : index
    %0 = vector.load %arg0[%c0, %c0_0] : memref<16x32xf32, #tpu.memory_space<vmem>>, vector<16x32xf32>
    %c0_1 = arith.constant 0 : index
    %c0_2 = arith.constant 0 : index
    %1 = vector.load %arg1[%c0_1, %c0_2] : memref<32x1xf32, #tpu.memory_space<vmem>>, vector<32x1xf32>
    %cst = arith.constant dense<0.000000e+00> : vector<16x1xf32>
    %2 = tpu.matmul %0, %1, %cst {dimension_numbers = #tpu.dot_dimension_numbers<[1], [0], [0], [1], [0, 0, 1, 1], [], []>} : vector<16x32xf32>, vector<32x1xf32>, vector<16x1xf32> -> vector<16x1xf32>
    %c0_3 = arith.constant 0 : index
    %c0_4 = arith.constant 0 : index
    %3 = vector.load %arg2[%c0_3, %c0_4] : memref<1x1xf32, #tpu.memory_space<vmem>>, vector<1x1xf32>
    %4 = vector.broadcast %3 : vector<1x1xf32> to vector<16x1xf32>
    %5 = arith.addf %2, %4 : vector<16x1xf32>
    %c0_5 = arith.constant 0 : index
    %c0_6 = arith.constant 0 : index
    %6 = vector.load %arg3[%c0_5, %c0_6] : memref<16x1xf32, #tpu.memory_space<vmem>>, vector<16x1xf32>
    tpu.vector_store %arg3[%c0_5, %c0_6], %5 {strides = array<i32>} : memref<16x1xf32, #tpu.memory_space<vmem>>, vector<16x1xf32>,
    return
  }
}

module attributes {stable_mosaic.version = 11 : i64} {
  func.func @_gru_seq_kernel(%arg0: i32, %arg1: memref<1x2x96xf32, #tpu.memory_space<vmem>>, %arg2: memref<32x96xf32, #tpu.memory_space<vmem>>, %arg3: memref<1x96xf32, #tpu.memory_space<vmem>>, %arg4: memref<1x2x32xf32, #tpu.memory_space<vmem>>, %arg5: memref<2x32xf32, #tpu.memory_space<vmem>>) attributes {dimension_semantics = [#tpu.dimension_semantics<arbitrary>], iteration_bounds = array<i64: 8>, scalar_prefetch = 0 : i64, scratch_operands = 1 : i64, tpu.core_type = #tpu.core_type<tc>, window_params = [{transform_indices = @transform_0, window_bounds = array<i64: 1, 2, 96>}, {pipeline_mode = #tpu.pipeline_mode<synchronous>, transform_indices = @transform_1, window_bounds = array<i64: 32, 96>}, {pipeline_mode = #tpu.pipeline_mode<synchronous>, transform_indices = @transform_2, window_bounds = array<i64: 1, 96>}, {transform_indices = @transform_3, window_bounds = array<i64: 1, 2, 32>}]} {
    %c0_i32 = arith.constant 0 : i32
    %0 = arith.cmpi eq, %arg0, %c0_i32 : i32
    %1 = arith.extui %0 : i1 to i32
    %c0_i32_0 = arith.constant 0 : i32
    %2 = arith.cmpi ne, %1, %c0_i32_0 : i32
    scf.if %2 {
      %cst_17 = arith.constant 0.000000e+00 : f32
      %41 = vector.broadcast %cst_17 : f32 to vector<2x32xf32>
      %c0_18 = arith.constant 0 : index
      %c0_19 = arith.constant 0 : index
      %42 = vector.load %arg5[%c0_18, %c0_19] : memref<2x32xf32, #tpu.memory_space<vmem>>, vector<2x32xf32>
      tpu.vector_store %arg5[%c0_18, %c0_19], %41 {strides = array<i32>} : memref<2x32xf32, #tpu.memory_space<vmem>>, vector<2x32xf32>,
    } else {
    }
    %c0 = arith.constant 0 : index
    %c0_1 = arith.constant 0 : index
    %3 = vector.load %arg5[%c0, %c0_1] : memref<2x32xf32, #tpu.memory_space<vmem>>, vector<2x32xf32>
    %c0_2 = arith.constant 0 : index
    %c0_3 = arith.constant 0 : index
    %c0_4 = arith.constant 0 : index
    %4 = vector.load %arg1[%c0_2, %c0_3, %c0_4] : memref<1x2x96xf32, #tpu.memory_space<vmem>>, vector<1x2x96xf32>
    %5 = vector.shape_cast %4 : vector<1x2x96xf32> to vector<2x96xf32>
    %c0_5 = arith.constant 0 : index
    %c0_6 = arith.constant 0 : index
    %6 = vector.load %arg2[%c0_5, %c0_6] : memref<32x96xf32, #tpu.memory_space<vmem>>, vector<32x96xf32>
    %cst = arith.constant dense<0.000000e+00> : vector<2x96xf32>
    %7 = tpu.matmul %3, %6, %cst {dimension_numbers = #tpu.dot_dimension_numbers<[1], [0], [0], [1], [0, 0, 1, 1], [], []>} : vector<2x32xf32>, vector<32x96xf32>, vector<2x96xf32> -> vector<2x96xf32>
    %c0_7 = arith.constant 0 : index
    %c0_8 = arith.constant 0 : index
    %8 = vector.load %arg3[%c0_7, %c0_8] : memref<1x96xf32, #tpu.memory_space<vmem>>, vector<1x96xf32>
    %9 = vector.broadcast %8 : vector<1x96xf32> to vector<2x96xf32>
    %10 = arith.addf %7, %9 : vector<2x96xf32>
    %11 = vector.extract_strided_slice %5 {offsets = [0, 0], sizes = [2, 32], strides = [1, 1]} : vector<2x96xf32> to vector<2x32xf32>
    %12 = vector.extract_strided_slice %10 {offsets = [0, 0], sizes = [2, 32], strides = [1, 1]} : vector<2x96xf32> to vector<2x32xf32>
    %13 = arith.addf %11, %12 : vector<2x32xf32>
    %14 = arith.negf %13 : vector<2x32xf32>
    %15 = math.exp %14 : vector<2x32xf32>
    %cst_9 = arith.constant 1.000000e+00 : f32
    %16 = vector.broadcast %cst_9 : f32 to vector<2x32xf32>
    %17 = arith.addf %16, %15 : vector<2x32xf32>
    %18 = arith.divf %16, %17 : vector<2x32xf32>
    %19 = vector.extract_strided_slice %5 {offsets = [0, 32], sizes = [2, 32], strides = [1, 1]} : vector<2x96xf32> to vector<2x32xf32>
    %20 = vector.extract_strided_slice %10 {offsets = [0, 32], sizes = [2, 32], strides = [1, 1]} : vector<2x96xf32> to vector<2x32xf32>
    %21 = arith.addf %19, %20 : vector<2x32xf32>
    %22 = arith.negf %21 : vector<2x32xf32>
    %23 = math.exp %22 : vector<2x32xf32>
    %cst_10 = arith.constant 1.000000e+00 : f32
    %24 = vector.broadcast %cst_10 : f32 to vector<2x32xf32>
    %25 = arith.addf %24, %23 : vector<2x32xf32>
    %26 = arith.divf %24, %25 : vector<2x32xf32>
    %27 = vector.extract_strided_slice %5 {offsets = [0, 64], sizes = [2, 32], strides = [1, 1]} : vector<2x96xf32> to vector<2x32xf32>
    %28 = vector.extract_strided_slice %10 {offsets = [0, 64], sizes = [2, 32], strides = [1, 1]} : vector<2x96xf32> to vector<2x32xf32>
    %29 = arith.mulf %18, %28 : vector<2x32xf32>
    %30 = arith.addf %27, %29 : vector<2x32xf32>
    %31 = math.tanh %30 : vector<2x32xf32>
    %cst_11 = arith.constant 1.000000e+00 : f32
    %32 = vector.broadcast %cst_11 : f32 to vector<2x32xf32>
    %33 = arith.subf %32, %26 : vector<2x32xf32>
    %34 = arith.mulf %33, %31 : vector<2x32xf32>
    %35 = arith.mulf %26, %3 : vector<2x32xf32>
    %36 = arith.addf %34, %35 : vector<2x32xf32>
    %c0_12 = arith.constant 0 : index
    %c0_13 = arith.constant 0 : index
    %37 = vector.load %arg5[%c0_12, %c0_13] : memref<2x32xf32, #tpu.memory_space<vmem>>, vector<2x32xf32>
    tpu.vector_store %arg5[%c0_12, %c0_13], %36 {strides = array<i32>} : memref<2x32xf32, #tpu.memory_space<vmem>>, vector<2x32xf32>,
    %c0_14 = arith.constant 0 : index
    %c0_15 = arith.constant 0 : index
    %c0_16 = arith.constant 0 : index
    %38 = vector.load %arg4[%c0_14, %c0_15, %c0_16] : memref<1x2x32xf32, #tpu.memory_space<vmem>>, vector<1x2x32xf32>
    %39 = vector.shape_cast %38 : vector<1x2x32xf32> to vector<2x32xf32>
    %40 = vector.shape_cast %36 : vector<2x32xf32> to vector<1x2x32xf32>
    tpu.vector_store %arg4[%c0_14, %c0_15, %c0_16], %40 {strides = array<i32>} : memref<1x2x32xf32, #tpu.memory_space<vmem>>, vector<1x2x32xf32>,
    return
  }
  func.func @transform_0(%arg0: i32) -> (i32, i32, i32) {
    %c0_i32 = arith.constant 0 : i32
    %c0_i32_0 = arith.constant 0 : i32
    %c0_i32_1 = arith.constant 0 : i32
    return %arg0, %c0_i32, %c0_i32_0 : i32, i32, i32
  }
  func.func @transform_1(%arg0: i32) -> (i32, i32) {
    %c0_i32 = arith.constant 0 : i32
    %c0_i32_0 = arith.constant 0 : i32
    %c0_i32_1 = arith.constant 0 : i32
    return %c0_i32, %c0_i32_0 : i32, i32
  }
  func.func @transform_2(%arg0: i32) -> (i32, i32) {
    %c0_i32 = arith.constant 0 : i32
    %c0_i32_0 = arith.constant 0 : i32
    %c0_i32_1 = arith.constant 0 : i32
    return %c0_i32, %c0_i32_0 : i32, i32
  }
  func.func @transform_3(%arg0: i32) -> (i32, i32, i32) {
    %c0_i32 = arith.constant 0 : i32
    %c0_i32_0 = arith.constant 0 : i32
    %c0_i32_1 = arith.constant 0 : i32
    return %arg0, %c0_i32, %c0_i32_0 : i32, i32, i32
  }
}

module attributes {stable_mosaic.version = 11 : i64} {
  func.func @_linear_kernel(%arg0: memref<2x32xf32, #tpu.memory_space<vmem>>, %arg1: memref<32x32xf32, #tpu.memory_space<vmem>>, %arg2: memref<1x32xf32, #tpu.memory_space<vmem>>, %arg3: memref<2x32xf32, #tpu.memory_space<vmem>>) attributes {dimension_semantics = [], scalar_prefetch = 0 : i64, scratch_operands = 0 : i64, tpu.core_type = #tpu.core_type<tc>} {
    %c0 = arith.constant 0 : index
    %c0_0 = arith.constant 0 : index
    %0 = vector.load %arg0[%c0, %c0_0] : memref<2x32xf32, #tpu.memory_space<vmem>>, vector<2x32xf32>
    %c0_1 = arith.constant 0 : index
    %c0_2 = arith.constant 0 : index
    %1 = vector.load %arg1[%c0_1, %c0_2] : memref<32x32xf32, #tpu.memory_space<vmem>>, vector<32x32xf32>
    %cst = arith.constant dense<0.000000e+00> : vector<2x32xf32>
    %2 = tpu.matmul %0, %1, %cst {dimension_numbers = #tpu.dot_dimension_numbers<[1], [0], [0], [1], [0, 0, 1, 1], [], []>} : vector<2x32xf32>, vector<32x32xf32>, vector<2x32xf32> -> vector<2x32xf32>
    %c0_3 = arith.constant 0 : index
    %c0_4 = arith.constant 0 : index
    %3 = vector.load %arg2[%c0_3, %c0_4] : memref<1x32xf32, #tpu.memory_space<vmem>>, vector<1x32xf32>
    %4 = vector.broadcast %3 : vector<1x32xf32> to vector<2x32xf32>
    %5 = arith.addf %2, %4 : vector<2x32xf32>
    %c0_5 = arith.constant 0 : index
    %c0_6 = arith.constant 0 : index
    %6 = vector.load %arg3[%c0_5, %c0_6] : memref<2x32xf32, #tpu.memory_space<vmem>>, vector<2x32xf32>
    tpu.vector_store %arg3[%c0_5, %c0_6], %5 {strides = array<i32>} : memref<2x32xf32, #tpu.memory_space<vmem>>, vector<2x32xf32>,
    return
  }
}

module attributes {stable_mosaic.version = 11 : i64} {
  func.func @_decoder_kernel(%arg0: i32, %arg1: memref<2x64xf32, #tpu.memory_space<vmem>>, %arg2: memref<1x2x192xf32, #tpu.memory_space<vmem>>, %arg3: memref<8x2x32xf32, #tpu.memory_space<vmem>>, %arg4: memref<8x2xf32, #tpu.memory_space<vmem>>, %arg5: memref<64x1xf32, #tpu.memory_space<vmem>>, %arg6: memref<2x2x32xf32, #tpu.memory_space<vmem>>, %arg7: memref<2x2xf32, #tpu.memory_space<vmem>>, %arg8: memref<64x1xf32, #tpu.memory_space<vmem>>, %arg9: memref<32x192xf32, #tpu.memory_space<vmem>>, %arg10: memref<32x192xf32, #tpu.memory_space<vmem>>, %arg11: memref<64x192xf32, #tpu.memory_space<vmem>>, %arg12: memref<1x192xf32, #tpu.memory_space<vmem>>, %arg13: memref<64x40xf32, #tpu.memory_space<vmem>>, %arg14: memref<1x40xf32, #tpu.memory_space<vmem>>, %arg15: memref<1x2x40xf32, #tpu.memory_space<vmem>>, %arg16: memref<2x64xf32, #tpu.memory_space<vmem>>) attributes {dimension_semantics = [#tpu.dimension_semantics<arbitrary>], iteration_bounds = array<i64: 5>, scalar_prefetch = 0 : i64, scratch_operands = 1 : i64, tpu.core_type = #tpu.core_type<tc>, window_params = [{pipeline_mode = #tpu.pipeline_mode<synchronous>, transform_indices = @transform_0, window_bounds = array<i64: 2, 64>}, {transform_indices = @transform_1, window_bounds = array<i64: 1, 2, 192>}, {pipeline_mode = #tpu.pipeline_mode<synchronous>, transform_indices = @transform_2, window_bounds = array<i64: 8, 2, 32>}, {pipeline_mode = #tpu.pipeline_mode<synchronous>, transform_indices = @transform_3, window_bounds = array<i64: 8, 2>}, {pipeline_mode = #tpu.pipeline_mode<synchronous>, transform_indices = @transform_4, window_bounds = array<i64: 64, 1>}, {pipeline_mode = #tpu.pipeline_mode<synchronous>, transform_indices = @transform_5, window_bounds = array<i64: 2, 2, 32>}, {pipeline_mode = #tpu.pipeline_mode<synchronous>, transform_indices = @transform_6, window_bounds = array<i64: 2, 2>}, {pipeline_mode = #tpu.pipeline_mode<synchronous>, transform_indices = @transform_7, window_bounds = array<i64: 64, 1>}, {pipeline_mode = #tpu.pipeline_mode<synchronous>, transform_indices = @transform_8, window_bounds = array<i64: 32, 192>}, {pipeline_mode = #tpu.pipeline_mode<synchronous>, transform_indices = @transform_9, window_bounds = array<i64: 32, 192>}, {pipeline_mode = #tpu.pipeline_mode<synchronous>, transform_indices = @transform_10, window_bounds = array<i64: 64, 192>}, {pipeline_mode = #tpu.pipeline_mode<synchronous>, transform_indices = @transform_11, window_bounds = array<i64: 1, 192>}, {pipeline_mode = #tpu.pipeline_mode<synchronous>, transform_indices = @transform_12, window_bounds = array<i64: 64, 40>}, {pipeline_mode = #tpu.pipeline_mode<synchronous>, transform_indices = @transform_13, window_bounds = array<i64: 1, 40>}, {transform_indices = @transform_14, window_bounds = array<i64: 1, 2, 40>}]} {
    %c0_i32 = arith.constant 0 : i32
    %0 = arith.cmpi eq, %arg0, %c0_i32 : i32
    %1 = arith.extui %0 : i1 to i32
    %c0_i32_0 = arith.constant 0 : i32
    %2 = arith.cmpi ne, %1, %c0_i32_0 : i32
    scf.if %2 {
      %c0_54 = arith.constant 0 : index
      %c0_55 = arith.constant 0 : index
      %100 = vector.load %arg1[%c0_54, %c0_55] : memref<2x64xf32, #tpu.memory_space<vmem>>, vector<2x64xf32>
      %c0_56 = arith.constant 0 : index
      %c0_57 = arith.constant 0 : index
      %101 = vector.load %arg16[%c0_56, %c0_57] : memref<2x64xf32, #tpu.memory_space<vmem>>, vector<2x64xf32>
      tpu.vector_store %arg16[%c0_56, %c0_57], %100 {strides = array<i32>} : memref<2x64xf32, #tpu.memory_space<vmem>>, vector<2x64xf32>,
    } else {
    }
    %c0 = arith.constant 0 : index
    %c0_1 = arith.constant 0 : index
    %3 = vector.load %arg16[%c0, %c0_1] : memref<2x64xf32, #tpu.memory_space<vmem>>, vector<2x64xf32>
    %c0_2 = arith.constant 0 : index
    %c0_3 = arith.constant 0 : index
    %c0_4 = arith.constant 0 : index
    %4 = vector.load %arg3[%c0_2, %c0_3, %c0_4] : memref<8x2x32xf32, #tpu.memory_space<vmem>>, vector<8x2x32xf32>
    %c0_5 = arith.constant 0 : index
    %c0_6 = arith.constant 0 : index
    %5 = vector.load %arg5[%c0_5, %c0_6] : memref<64x1xf32, #tpu.memory_space<vmem>>, vector<64x1xf32>
    %cst = arith.constant dense<0.000000e+00> : vector<2x1xf32>
    %6 = tpu.matmul %3, %5, %cst {dimension_numbers = #tpu.dot_dimension_numbers<[1], [0], [0], [1], [0, 0, 1, 1], [], []>} : vector<2x64xf32>, vector<64x1xf32>, vector<2x1xf32> -> vector<2x1xf32>
    %c0_7 = arith.constant 0 : index
    %c0_8 = arith.constant 0 : index
    %7 = vector.load %arg4[%c0_7, %c0_8] : memref<8x2xf32, #tpu.memory_space<vmem>>, vector<8x2xf32>
    %8 = vector.shape_cast %6 : vector<2x1xf32> to vector<1x2xf32>
    %9 = vector.broadcast %8 : vector<1x2xf32> to vector<8x2xf32>
    %10 = arith.addf %7, %9 : vector<8x2xf32>
    %cst_9 = arith.constant 0.000000e+00 : f32
    %11 = vector.broadcast %cst_9 : f32 to vector<8x2xf32>
    %12 = arith.maximumf %10, %11 : vector<8x2xf32>
    %cst_10 = arith.constant dense<0xFF800000> : vector<2xf32>
    %13 = vector.multi_reduction <maximumf>, %12, %cst_10 [0] : vector<8x2xf32> to vector<2xf32>
    %cst_11 = arith.constant 0xFF800000 : f32
    %14 = vector.broadcast %cst_11 : f32 to vector<2xf32>
    %15 = arith.maximumf %14, %13 : vector<2xf32>
    %16 = vector.shape_cast %15 : vector<2xf32> to vector<1x2xf32>
    %17 = vector.broadcast %16 : vector<1x2xf32> to vector<8x2xf32>
    %18 = arith.subf %12, %17 : vector<8x2xf32>
    %19 = math.exp %18 : vector<8x2xf32>
    %cst_12 = arith.constant dense<0.000000e+00> : vector<2xf32>
    %20 = vector.multi_reduction <add>, %19, %cst_12 [0] : vector<8x2xf32> to vector<2xf32>
    %21 = vector.shape_cast %20 : vector<2xf32> to vector<1x2xf32>
    %22 = vector.broadcast %21 : vector<1x2xf32> to vector<8x2xf32>
    %23 = arith.divf %19, %22 : vector<8x2xf32>
    %24 = vector.shape_cast %23 : vector<8x2xf32> to vector<8x2x1xf32>
    %25 = vector.broadcast %24 : vector<8x2x1xf32> to vector<8x2x32xf32>
    %26 = arith.mulf %25, %4 : vector<8x2x32xf32>
    %cst_13 = arith.constant dense<0.000000e+00> : vector<2x32xf32>
    %27 = vector.multi_reduction <add>, %26, %cst_13 [0] : vector<8x2x32xf32> to vector<2x32xf32>
    %c0_14 = arith.constant 0 : index
    %c0_15 = arith.constant 0 : index
    %c0_16 = arith.constant 0 : index
    %28 = vector.load %arg6[%c0_14, %c0_15, %c0_16] : memref<2x2x32xf32, #tpu.memory_space<vmem>>, vector<2x2x32xf32>
    %c0_17 = arith.constant 0 : index
    %c0_18 = arith.constant 0 : index
    %29 = vector.load %arg8[%c0_17, %c0_18] : memref<64x1xf32, #tpu.memory_space<vmem>>, vector<64x1xf32>
    %cst_19 = arith.constant dense<0.000000e+00> : vector<2x1xf32>
    %30 = tpu.matmul %3, %29, %cst_19 {dimension_numbers = #tpu.dot_dimension_numbers<[1], [0], [0], [1], [0, 0, 1, 1], [], []>} : vector<2x64xf32>, vector<64x1xf32>, vector<2x1xf32> -> vector<2x1xf32>
    %c0_20 = arith.constant 0 : index
    %c0_21 = arith.constant 0 : index
    %31 = vector.load %arg7[%c0_20, %c0_21] : memref<2x2xf32, #tpu.memory_space<vmem>>, vector<2x2xf32>
    %32 = vector.shape_cast %30 : vector<2x1xf32> to vector<1x2xf32>
    %33 = vector.broadcast %32 : vector<1x2xf32> to vector<2x2xf32>
    %34 = arith.addf %31, %33 : vector<2x2xf32>
    %cst_22 = arith.constant 0.000000e+00 : f32
    %35 = vector.broadcast %cst_22 : f32 to vector<2x2xf32>
    %36 = arith.maximumf %34, %35 : vector<2x2xf32>
    %cst_23 = arith.constant dense<0xFF800000> : vector<2xf32>
    %37 = vector.multi_reduction <maximumf>, %36, %cst_23 [0] : vector<2x2xf32> to vector<2xf32>
    %cst_24 = arith.constant 0xFF800000 : f32
    %38 = vector.broadcast %cst_24 : f32 to vector<2xf32>
    %39 = arith.maximumf %38, %37 : vector<2xf32>
    %40 = vector.shape_cast %39 : vector<2xf32> to vector<1x2xf32>
    %41 = vector.broadcast %40 : vector<1x2xf32> to vector<2x2xf32>
    %42 = arith.subf %36, %41 : vector<2x2xf32>
    %43 = math.exp %42 : vector<2x2xf32>
    %cst_25 = arith.constant dense<0.000000e+00> : vector<2xf32>
    %44 = vector.multi_reduction <add>, %43, %cst_25 [0] : vector<2x2xf32> to vector<2xf32>
    %45 = vector.shape_cast %44 : vector<2xf32> to vector<1x2xf32>
    %46 = vector.broadcast %45 : vector<1x2xf32> to vector<2x2xf32>
    %47 = arith.divf %43, %46 : vector<2x2xf32>
    %48 = vector.shape_cast %47 : vector<2x2xf32> to vector<2x2x1xf32>
    %49 = vector.broadcast %48 : vector<2x2x1xf32> to vector<2x2x32xf32>
    %50 = arith.mulf %49, %28 : vector<2x2x32xf32>
    %cst_26 = arith.constant dense<0.000000e+00> : vector<2x32xf32>
    %51 = vector.multi_reduction <add>, %50, %cst_26 [0] : vector<2x2x32xf32> to vector<2x32xf32>
    %c0_27 = arith.constant 0 : index
    %c0_28 = arith.constant 0 : index
    %52 = vector.load %arg9[%c0_27, %c0_28] : memref<32x192xf32, #tpu.memory_space<vmem>>, vector<32x192xf32>
    %cst_29 = arith.constant dense<0.000000e+00> : vector<2x192xf32>
    %53 = tpu.matmul %27, %52, %cst_29 {dimension_numbers = #tpu.dot_dimension_numbers<[1], [0], [0], [1], [0, 0, 1, 1], [], []>} : vector<2x32xf32>, vector<32x192xf32>, vector<2x192xf32> -> vector<2x192xf32>
    %c0_30 = arith.constant 0 : index
    %c0_31 = arith.constant 0 : index
    %54 = vector.load %arg10[%c0_30, %c0_31] : memref<32x192xf32, #tpu.memory_space<vmem>>, vector<32x192xf32>
    %cst_32 = arith.constant dense<0.000000e+00> : vector<2x192xf32>
    %55 = tpu.matmul %51, %54, %cst_32 {dimension_numbers = #tpu.dot_dimension_numbers<[1], [0], [0], [1], [0, 0, 1, 1], [], []>} : vector<2x32xf32>, vector<32x192xf32>, vector<2x192xf32> -> vector<2x192xf32>
    %56 = arith.addf %53, %55 : vector<2x192xf32>
    %c0_33 = arith.constant 0 : index
    %c0_34 = arith.constant 0 : index
    %c0_35 = arith.constant 0 : index
    %57 = vector.load %arg2[%c0_33, %c0_34, %c0_35] : memref<1x2x192xf32, #tpu.memory_space<vmem>>, vector<1x2x192xf32>
    %58 = vector.shape_cast %57 : vector<1x2x192xf32> to vector<2x192xf32>
    %59 = arith.addf %56, %58 : vector<2x192xf32>
    %c0_36 = arith.constant 0 : index
    %c0_37 = arith.constant 0 : index
    %60 = vector.load %arg11[%c0_36, %c0_37] : memref<64x192xf32, #tpu.memory_space<vmem>>, vector<64x192xf32>
    %cst_38 = arith.constant dense<0.000000e+00> : vector<2x192xf32>
    %61 = tpu.matmul %3, %60, %cst_38 {dimension_numbers = #tpu.dot_dimension_numbers<[1], [0], [0], [1], [0, 0, 1, 1], [], []>} : vector<2x64xf32>, vector<64x192xf32>, vector<2x192xf32> -> vector<2x192xf32>
    %c0_39 = arith.constant 0 : index
    %c0_40 = arith.constant 0 : index
    %62 = vector.load %arg12[%c0_39, %c0_40] : memref<1x192xf32, #tpu.memory_space<vmem>>, vector<1x192xf32>
    %63 = vector.broadcast %62 : vector<1x192xf32> to vector<2x192xf32>
    %64 = arith.addf %61, %63 : vector<2x192xf32>
    %65 = vector.extract_strided_slice %59 {offsets = [0, 0], sizes = [2, 64], strides = [1, 1]} : vector<2x192xf32> to vector<2x64xf32>
    %66 = vector.extract_strided_slice %64 {offsets = [0, 0], sizes = [2, 64], strides = [1, 1]} : vector<2x192xf32> to vector<2x64xf32>
    %67 = arith.addf %65, %66 : vector<2x64xf32>
    %68 = arith.negf %67 : vector<2x64xf32>
    %69 = math.exp %68 : vector<2x64xf32>
    %cst_41 = arith.constant 1.000000e+00 : f32
    %70 = vector.broadcast %cst_41 : f32 to vector<2x64xf32>
    %71 = arith.addf %70, %69 : vector<2x64xf32>
    %72 = arith.divf %70, %71 : vector<2x64xf32>
    %73 = vector.extract_strided_slice %59 {offsets = [0, 64], sizes = [2, 64], strides = [1, 1]} : vector<2x192xf32> to vector<2x64xf32>
    %74 = vector.extract_strided_slice %64 {offsets = [0, 64], sizes = [2, 64], strides = [1, 1]} : vector<2x192xf32> to vector<2x64xf32>
    %75 = arith.addf %73, %74 : vector<2x64xf32>
    %76 = arith.negf %75 : vector<2x64xf32>
    %77 = math.exp %76 : vector<2x64xf32>
    %cst_42 = arith.constant 1.000000e+00 : f32
    %78 = vector.broadcast %cst_42 : f32 to vector<2x64xf32>
    %79 = arith.addf %78, %77 : vector<2x64xf32>
    %80 = arith.divf %78, %79 : vector<2x64xf32>
    %81 = vector.extract_strided_slice %59 {offsets = [0, 128], sizes = [2, 64], strides = [1, 1]} : vector<2x192xf32> to vector<2x64xf32>
    %82 = vector.extract_strided_slice %64 {offsets = [0, 128], sizes = [2, 64], strides = [1, 1]} : vector<2x192xf32> to vector<2x64xf32>
    %83 = arith.mulf %72, %82 : vector<2x64xf32>
    %84 = arith.addf %81, %83 : vector<2x64xf32>
    %85 = math.tanh %84 : vector<2x64xf32>
    %cst_43 = arith.constant 1.000000e+00 : f32
    %86 = vector.broadcast %cst_43 : f32 to vector<2x64xf32>
    %87 = arith.subf %86, %80 : vector<2x64xf32>
    %88 = arith.mulf %87, %85 : vector<2x64xf32>
    %89 = arith.mulf %80, %3 : vector<2x64xf32>
    %90 = arith.addf %88, %89 : vector<2x64xf32>
    %c0_44 = arith.constant 0 : index
    %c0_45 = arith.constant 0 : index
    %91 = vector.load %arg16[%c0_44, %c0_45] : memref<2x64xf32, #tpu.memory_space<vmem>>, vector<2x64xf32>
    tpu.vector_store %arg16[%c0_44, %c0_45], %90 {strides = array<i32>} : memref<2x64xf32, #tpu.memory_space<vmem>>, vector<2x64xf32>,
    %c0_46 = arith.constant 0 : index
    %c0_47 = arith.constant 0 : index
    %92 = vector.load %arg13[%c0_46, %c0_47] : memref<64x40xf32, #tpu.memory_space<vmem>>, vector<64x40xf32>
    %cst_48 = arith.constant dense<0.000000e+00> : vector<2x40xf32>
    %93 = tpu.matmul %90, %92, %cst_48 {dimension_numbers = #tpu.dot_dimension_numbers<[1], [0], [0], [1], [0, 0, 1, 1], [], []>} : vector<2x64xf32>, vector<64x40xf32>, vector<2x40xf32> -> vector<2x40xf32>
    %c0_49 = arith.constant 0 : index
    %c0_50 = arith.constant 0 : index
    %94 = vector.load %arg14[%c0_49, %c0_50] : memref<1x40xf32, #tpu.memory_space<vmem>>, vector<1x40xf32>
    %95 = vector.broadcast %94 : vector<1x40xf32> to vector<2x40xf32>
    %96 = arith.addf %93, %95 : vector<2x40xf32>
    %c0_51 = arith.constant 0 : index
    %c0_52 = arith.constant 0 : index
    %c0_53 = arith.constant 0 : index
    %97 = vector.load %arg15[%c0_51, %c0_52, %c0_53] : memref<1x2x40xf32, #tpu.memory_space<vmem>>, vector<1x2x40xf32>
    %98 = vector.shape_cast %97 : vector<1x2x40xf32> to vector<2x40xf32>
    %99 = vector.shape_cast %96 : vector<2x40xf32> to vector<1x2x40xf32>
    tpu.vector_store %arg15[%c0_51, %c0_52, %c0_53], %99 {strides = array<i32>} : memref<1x2x40xf32, #tpu.memory_space<vmem>>, vector<1x2x40xf32>,
    return
  }
  func.func @transform_0(%arg0: i32) -> (i32, i32) {
    %c0_i32 = arith.constant 0 : i32
    %c0_i32_0 = arith.constant 0 : i32
    %c0_i32_1 = arith.constant 0 : i32
    return %c0_i32, %c0_i32_0 : i32, i32
  }
  func.func @transform_1(%arg0: i32) -> (i32, i32, i32) {
    %c0_i32 = arith.constant 0 : i32
    %c0_i32_0 = arith.constant 0 : i32
    %c0_i32_1 = arith.constant 0 : i32
    return %arg0, %c0_i32, %c0_i32_0 : i32, i32, i32
  }
  func.func @transform_2(%arg0: i32) -> (i32, i32, i32) {
    %c0_i32 = arith.constant 0 : i32
    %c0_i32_0 = arith.constant 0 : i32
    %c0_i32_1 = arith.constant 0 : i32
    %c0_i32_2 = arith.constant 0 : i32
    return %c0_i32, %c0_i32_0, %c0_i32_1 : i32, i32, i32
  }
  func.func @transform_3(%arg0: i32) -> (i32, i32) {
    %c0_i32 = arith.constant 0 : i32
    %c0_i32_0 = arith.constant 0 : i32
    %c0_i32_1 = arith.constant 0 : i32
    return %c0_i32, %c0_i32_0 : i32, i32
  }
  func.func @transform_4(%arg0: i32) -> (i32, i32) {
    %c0_i32 = arith.constant 0 : i32
    %c0_i32_0 = arith.constant 0 : i32
    %c0_i32_1 = arith.constant 0 : i32
    return %c0_i32, %c0_i32_0 : i32, i32
  }
  func.func @transform_5(%arg0: i32) -> (i32, i32, i32) {
    %c0_i32 = arith.constant 0 : i32
    %c0_i32_0 = arith.constant 0 : i32
    %c0_i32_1 = arith.constant 0 : i32
    %c0_i32_2 = arith.constant 0 : i32
    return %c0_i32, %c0_i32_0, %c0_i32_1 : i32, i32, i32
  }
  func.func @transform_6(%arg0: i32) -> (i32, i32) {
    %c0_i32 = arith.constant 0 : i32
    %c0_i32_0 = arith.constant 0 : i32
    %c0_i32_1 = arith.constant 0 : i32
    return %c0_i32, %c0_i32_0 : i32, i32
  }
  func.func @transform_7(%arg0: i32) -> (i32, i32) {
    %c0_i32 = arith.constant 0 : i32
    %c0_i32_0 = arith.constant 0 : i32
    %c0_i32_1 = arith.constant 0 : i32
    return %c0_i32, %c0_i32_0 : i32, i32
  }
  func.func @transform_8(%arg0: i32) -> (i32, i32) {
    %c0_i32 = arith.constant 0 : i32
    %c0_i32_0 = arith.constant 0 : i32
    %c0_i32_1 = arith.constant 0 : i32
    return %c0_i32, %c0_i32_0 : i32, i32
  }
  func.func @transform_9(%arg0: i32) -> (i32, i32) {
    %c0_i32 = arith.constant 0 : i32
    %c0_i32_0 = arith.constant 0 : i32
    %c0_i32_1 = arith.constant 0 : i32
    return %c0_i32, %c0_i32_0 : i32, i32
  }
  func.func @transform_10(%arg0: i32) -> (i32, i32) {
    %c0_i32 = arith.constant 0 : i32
    %c0_i32_0 = arith.constant 0 : i32
    %c0_i32_1 = arith.constant 0 : i32
    return %c0_i32, %c0_i32_0 : i32, i32
  }
  func.func @transform_11(%arg0: i32) -> (i32, i32) {
    %c0_i32 = arith.constant 0 : i32
    %c0_i32_0 = arith.constant 0 : i32
    %c0_i32_1 = arith.constant 0 : i32
    return %c0_i32, %c0_i32_0 : i32, i32
  }
  func.func @transform_12(%arg0: i32) -> (i32, i32) {
    %c0_i32 = arith.constant 0 : i32
    %c0_i32_0 = arith.constant 0 : i32
    %c0_i32_1 = arith.constant 0 : i32
    return %c0_i32, %c0_i32_0 : i32, i32
  }
  func.func @transform_13(%arg0: i32) -> (i32, i32) {
    %c0_i32 = arith.constant 0 : i32
    %c0_i32_0 = arith.constant 0 : i32
    %c0_i32_1 = arith.constant 0 : i32
    return %c0_i32, %c0_i32_0 : i32, i32
  }
  func.func @transform_14(%arg0: i32) -> (i32, i32, i32) {
    %c0_i32 = arith.constant 0 : i32
    %c0_i32_0 = arith.constant 0 : i32
    %c0_i32_1 = arith.constant 0 : i32
    return %arg0, %c0_i32, %c0_i32_0 : i32, i32, i32
  }
}

</mosaic_0001>

<bundles_post_ra>
// kernel: a_conv_gnn_forward.15
= control target key start
LH: loop header
LB: loop body
LE: loop exit
PB: predicated region body
PF: predicated region fallthrough
CT: control target
= control target key end

     0   :  { %vm25_vm0 = vcmask 1041408   ;;  %v197_v0 = vmov 0.0   ;;  %vm198_vm1 = vmmov 0   ;;  %v108_v3 = vlaneseq  ;;  %s247_s0 = inlined_call_operand.vmem [shape: f32[10,16], index: 0, kind: input, shape index: {}]   ;;  %s248_s1 = inlined_call_operand.vmem [shape: f32[2,10], index: 1, kind: input, shape index: {}]   ;;  %s249_s2 = inlined_call_operand.vmem [shape: f32[2,1], index: 2, kind: input, shape index: {}]   ;;  %s250_s4 = inlined_call_operand.vmem [shape: f32[2,16], index: 4, kind: output, shape index: {1}]   ;;  %s251_s3 = inlined_call_operand.vmem [shape: f32[2,16], index: 3, kind: output, shape index: {0}]  }
   0x1   :  { %184 = vmatprep.subr.mxu0 %v197_v0  ;;  %v17_v1 = vld [vmem:[%s247_s0 + $0x8] sm:$0x3]  ;;  %v16_v2 = vld [vmem:[%s247_s0] sm:$0xff]  ;;  %188 = vmatprep.mubr.msk.f32.mxu0 %vm198_vm1, %v197_v0  ;;  %vm21_vm2 = vcmask 80896   ;;  %v199_v5 = vmov 0   ;;  %vm106_vm4 = vcmask 123904  }
   0x2   :  { %185 = vmatpush3.msk.msra.mxu0 %vm25_vm0, %v17_v1  ;;  %v18_v4 = vld [vmem:[%s248_s1] sm:$0x3]  ;;  %194 = vset.pattern.permute.xlu0 %v199_v5  ;;  %v109_v8 = vshrl.u32 %v108_v3, 7  ;;  %vm146_vm6 = vcmask 130048   ;;  %vm167_vm9 = vcmask 1041409  }
   0x3   :  { %v19_v6 = vld [vmem:[%s249_s2] sm:$0x3]  ;;  %186 = vmatprep.subr.mxu0 %v197_v0 }
   0x4   :  { %v20_v7 = vmax.f32 %v19_v6, 1.0  ;;  %187 = vmatpush3.msra.mxu0 %v16_v2  ;;  %v110_v9 = vsub.s32 0, %v109_v8  ;;  %v121_v10 = vsub.s32 1, %v109_v8 }
   0x5   :  { %189 = vmatmul.mubr.msk.f32.vlgmr.msra.gmra.mxu0 %vm21_vm2, %v18_v4 }
   0x6   :  { %101 = vperm.xlu0 %194, %v20_v7   ;;  %v111_v11 = vrot.slane %v18_v4, %v110_v9  ;;  %v122_v12 = vrot.slane %v18_v4, %v121_v10 }
   0x8   :  { %117 = vbcast.lane.b32.xlu1 %v111_v11, 264 }
   0xa   :  { %113 = vbcast.lane.b32.xlu0 %v111_v11, 256 }
   0xc   :  { %124 = vbcast.lane.b32.xlu1 %v122_v12, 256 }
   0xe   :  { %128 = vbcast.lane.b32.xlu0 %v122_v12, 264 }
  0x7a   :  { %v118_v13 = vpop.permute.xlu1 %117 }
  0x7b   :  { %vm131_vm3 = vcmp.gt.f32.partialorder %v118_v13, 0.0 }
  0x7c   :  { %v143_v16 = vsel %vm131_vm3, %v17_v1, -1e+30 }
  0x7d   :  { %v148_v18 = vsel %vm106_vm4, %v143_v16, -inf }
  0x7e   :  { %v125_v15 = vpop.permute.xlu1 %124 }
  0x7f   :  { %vm132_vm5 = vcmp.gt.f32.partialorder %v125_v15, 0.0 }
  0x80   :  { %v144_v20 = vsel %vm132_vm5, %v16_v2, -1e+30 }
  0x81   :  { %v102_v14 = vpop.permute.xlu0 %101  ;;  %v156_v24 = vsel %vm146_vm6, %v144_v20, -inf }
  0x82   :  { %195 = vrcp.f32 %v102_v14 }
  0x85   :  { %v114_v17 = vpop.permute.xlu0 %113 }
  0x86   :  { %vm130_vm7 = vcmp.gt.f32.partialorder %v114_v17, 0.0 }
  0x87   :  { %v142_v19 = vsel %vm130_vm7, %v16_v2, -1e+30 }
  0x88   :  { %v147_v21 = vsel %vm146_vm6, %v142_v19, -inf }
  0x89   :  { %v149_v22 = vmax.f32 %v147_v21, %v148_v18  ;;  %v129_v23 = vpop.permute.xlu0 %128 }
  0x8a   :  { %vm133_vm8 = vcmp.gt.f32.partialorder %v129_v23, 0.0 }
  0x8b   :  { %v150_v25 = vrot.slane %v149_v22, 4  ;;  %v145_v26 = vsel %vm133_vm8, %v17_v1, -1e+30 }
  0x8c   :  { %v157_v27 = vsel %vm106_vm4, %v145_v26, -inf }
  0x8d   :  { %v151_v28 = vmax.f32 %v149_v22, %v150_v25  ;;  %v158_v29 = vmax.f32 %v156_v24, %v157_v27 }
  0x8f   :  { %v152_v30 = vrot.slane %v151_v28, 2  ;;  %v159_v31 = vrot.slane %v158_v29, 4  ;;  %v196_v41 = vpop.eup %195 }
  0x91   :  { %v153_v32 = vmax.f32 %v151_v28, %v152_v30  ;;  %v160_v33 = vmax.f32 %v158_v29, %v159_v31 }
  0x93   :  { %v154_v34 = vrot.slane %v153_v32, 1  ;;  %v161_v35 = vrot.slane %v160_v33, 2 }
  0x95   :  { %v162_v36 = vmax.f32 %v160_v33, %v161_v35  ;;  %v155_v37 = vmax.f32 %v153_v32, %v154_v34 }
  0x97   :  { %v163_v38 = vrot.slane %v162_v36, 1 }
  0x99   :  { %v164_v39 = vmax.f32 %v162_v36, %v163_v38 }
  0x9b   :  { %v168_v40 = vsel %vm167_vm9, %v164_v39, %v155_v37 }
  0x9c   :  { %170 = vst.msk [vmem:[%s250_s4] sm:$0x3] %vm106_vm4, %v168_v40 }
  0xc5   :  { %v95_v42 = vpop.f32.mrf.mxu0 }
  0xc6   :  { %v105_v43 = vmul.f32 %v196_v41, %v95_v42 }
  0xc7   :  { %v190_v44 = vpop.f32.mrf.mxu0 }
  0xc8   :  { %107 = vst.msk [vmem:[%s251_s3] sm:$0x3] %vm106_vm4, %v105_v43 }

// kernel: a_conv_gnn_forward.14
= control target key start
LH: loop header
LB: loop body
LE: loop exit
PB: predicated region body
PF: predicated region fallthrough
CT: control target
= control target key end

     0   :  { %vm21_vm0 = vcmask 130048   ;;  %vm112_vm1 = vcmask 80896   ;;  %vm119_vm2 = vcmask 1041408   ;;  %vm199_vm3 = vcmask 123904   ;;  %s288_s2 = inlined_call_operand.vmem [shape: f32[16,16], index: 2, kind: input, shape index: {}]   ;;  %s289_s1 = inlined_call_operand.vmem [shape: f32[10,16], index: 1, kind: input, shape index: {}]   ;;  %s290_s0 = inlined_call_operand.vmem [shape: f32[10,10], index: 0, kind: input, shape index: {}]   ;;  %s291_s3 = inlined_call_operand.vmem [shape: f32[1,16], index: 3, kind: input, shape index: {}]   ;;  %s292_s4 = inlined_call_operand.vmem [shape: f32[10,16], index: 4, kind: output, shape index: {}]  }
   0x1   :  { %v20_v0 = vld [vmem:[%s288_s2 + $0x8] sm:$0xff]  ;;  %v19_v1 = vld [vmem:[%s288_s2] sm:$0xff] }
   0x2   :  { %v17_v2 = vld [vmem:[%s289_s1] sm:$0xff]  ;;  %219 = vmatprep.subr.mxu0 %v20_v0  ;;  %v18_v3 = vld [vmem:[%s289_s1 + $0x8] sm:$0x3] }
   0x3   :  { %223 = vmatprep.mubr.msk.f32.mxu0 %vm21_vm0, %v17_v2  ;;  %220 = vmatpush3.msra.mxu0 %v20_v0  ;;  %v103_v4 = vld [vmem:[%s290_s0] sm:$0xff]  ;;  %v104_v7 = vld [vmem:[%s290_s0 + $0x8] sm:$0x3] }
   0x4   :  { %221 = vmatprep.subr.mxu0 %v19_v1  ;;  %230 = vmatprep.mubr.msk.f32.mxu1 %vm112_vm1, %v103_v4  ;;  %v207_v8 = vld [vmem:[%s291_s3] ss:$0 sm:$0xff] }
   0x5   :  { %222 = vmatpush3.msra.mxu0 %v19_v1 }
   0x6   :  { %224 = vmatmul.mubr.msk.f32.vlgmr.msra.gmra.mxu0 %vm21_vm0, %v18_v3 }
  0xc6   :  { %v225_v5 = vpop.f32.mrf.mxu0 }
  0xc7   :  { %226 = vmatprep.subr.msk.mxu1 %vm119_vm2, %v225_v5 }
  0xc8   :  { %v94_v6 = vpop.f32.mrf.mxu0  ;;  %227 = vmatpush3.msk.msra.mxu1 %vm119_vm2, %v225_v5 }
  0xc9   :  { %228 = vmatprep.subr.mxu1 %v94_v6 }
  0xca   :  { %229 = vmatpush3.msra.mxu1 %v94_v6 }
  0xcb   :  { %231 = vmatmul.mubr.msk.f32.vlgmr.msra.gmra.mxu1 %vm112_vm1, %v104_v7 }
 0x18b   :  { %v232_v9 = vpop.f32.mrf.mxu1 }
 0x18c   :  { %v195_v10 = vadd.f32 %v232_v9, %v207_v8 }
 0x18d   :  { %v189_v11 = vpop.f32.mrf.mxu1 }
 0x18e   :  { %200 = vst.msk [vmem:[%s292_s4 + $0x8] sm:$0x3] %vm199_vm3, %v195_v10  ;;  %v190_v12 = vadd.f32 %v207_v8, %v189_v11 }
 0x190   :  { %198 = vst.msk [vmem:[%s292_s4] sm:$0xff] %vm21_vm0, %v190_v12 }

// kernel: a_conv_gnn_forward.18
= control target key start
LH: loop header
LB: loop body
LE: loop exit
PB: predicated region body
PF: predicated region fallthrough
CT: control target
= control target key end

     0   :  { %v133_v3 = vmov 0.0   ;;  %vm32_vm0 = vcmask 130048   ;;  %v22_v7 = vlaneseq  ;;  %vm117_vm1 = vcmask 523264   ;;  %s187_s1 = inlined_call_operand.vmem [shape: f32[16,192], index: 1, kind: input, shape index: {}]   ;;  %s188_s0 = inlined_call_operand.vmem [shape: f32[10,16], index: 0, kind: input, shape index: {}]   ;;  %s189_s2 = inlined_call_operand.vmem [shape: f32[1,192], index: 2, kind: input, shape index: {}]   ;;  %s190_s3 = inlined_call_operand.vmem [shape: f32[10,192], index: 3, kind: output, shape index: {}]  }
   0x1   :  { %v19_v0 = vld [vmem:[%s187_s1 + $0x18] sm:$0xff]  ;;  %v18_v1 = vld [vmem:[%s187_s1 + $0x10] sm:$0xff]  ;;  %v17_v2 = vld [vmem:[%s187_s1 + $0x8] sm:$0xff]  ;;  %103 = vmatprep.mubr.f32.mxu0 %v133_v3  ;;  %109 = vmatprep.mubr.f32.mxu1 %v133_v3  ;;  %vm120_vm2 = vcmask 517120  }
   0x2   :  { %67 = vmatprep.subr.mxu0 %v19_v0  ;;  %128 = vmatprep.subr.mxu1 %v19_v0  ;;  %v16_v4 = vld [vmem:[%s187_s1] sm:$0xff]  ;;  %v15_v6 = vld [vmem:[%s188_s0 + $0x8] sm:$0x3]  ;;  %v23_v8 = vshrl.u32 %v22_v7, 7 }
   0x3   :  { %68 = vmatpush1.msra.mxu0 %v18_v1  ;;  %130 = vmatpush1.msra.mxu1 %v18_v1  ;;  %v14_v5 = vld [vmem:[%s188_s0] sm:$0xff] }
   0x4   :  { %69 = vmatprep.subr.mxu0 %v17_v2  ;;  %129 = vmatprep.subr.mxu1 %v17_v2  ;;  %v24_v9 = vsub.s32 0, %v23_v8  ;;  %v20_v10 = vld [vmem:[%s189_s2] sm:$0x3]  ;;  %v28_v11 = vsub.s32 1, %v23_v8 }
   0x5   :  { %70 = vmatpush1.msra.mxu0 %v16_v4  ;;  %131 = vmatpush1.msra.mxu1 %v16_v4 }
   0x6   :  { %126 = vmatmul.mubr.msk.f32.vlgmr.msra.gmra.mxu0 %vm32_vm0, %v14_v5  ;;  %127 = vmatmul.mubr.msk.f32.vlgmr.msra.gmra.mxu1 %vm32_vm0, %v15_v6  ;;  %v25_v12 = vrot.slane %v20_v10, %v24_v9  ;;  %v29_v13 = vrot.slane %v20_v10, %v28_v11 }
  0xc6   :  { %v105_v14 = vpop.f32.mrf.mxu0  ;;  %v111_v15 = vpop.f32.mrf.mxu1 }
  0xc7   :  { %v106_v16 = vadd.f32 %v105_v14, %v25_v12  ;;  %v112_v17 = vadd.f32 %v111_v15, %v25_v12 }
  0xc8   :  { %v107_v18 = vpop.f32.mrf.mxu0  ;;  %v113_v19 = vpop.f32.mrf.mxu1 }
  0xc9   :  { %116 = vst [vmem:[%s190_s3] sm:$0xff] %v106_v16  ;;  %119 = vst [vmem:[%s190_s3 + $0x10] sm:$0x3] %v112_v17  ;;  %v108_v20 = vadd.f32 %v107_v18, %v29_v13  ;;  %v114_v21 = vadd.f32 %v113_v19, %v29_v13 }
  0xcb   :  { %118 = vst.msk [vmem:[%s190_s3 + $0x8] sm:$0xff] %vm117_vm1, %v108_v20 }
  0xcc   :  { %121 = vst.msk [vmem:[%s190_s3 + $0x18] sm:$0x3] %vm120_vm2, %v114_v21 }

// kernel: a_conv_gnn_forward.20
= control target key start
LH: loop header
LB: loop body
LE: loop exit
PB: predicated region body
PF: predicated region fallthrough
CT: control target
= control target key end

     0   :  { %v128_v0 = vmov 0.0   ;;  %vm129_vm0 = vmmov 0   ;;  %vm28_vm1 = vcmask 261120   ;;  %vm102_vm2 = vcmask 3072   ;;  %s171_s1 = inlined_call_operand.vmem [shape: f32[32,1], index: 1, kind: input, shape index: {}]   ;;  %s172_s2 = inlined_call_operand.<no memory space> [shape: f32[1,1], index: 2, kind: input, shape index: {}]   ;;  %s173_s0 = inlined_call_operand.vmem [shape: f32[4,32], index: 0, kind: input, shape index: {}]   ;;  %s174_s3 = inlined_call_operand.vmem [shape: f32[4,1], index: 3, kind: output, shape index: {}]  }
   0x1   :  { %115 = vmatprep.subr.mxu0 %v128_v0  ;;  %v20_v1 = vld [vmem:[%s171_s1 + $0x18] sm:$0xff]  ;;  %v19_v2 = vld [vmem:[%s171_s1 + $0x10] sm:$0xff]  ;;  %123 = vmatprep.mubr.msk.f32.mxu0 %vm129_vm0, %v128_v0  ;;  %v8_v3 = vstv %s172_s2  ;;  %v18_v4 = vld [vmem:[%s171_s1 + $0x8] sm:$0xff] }
   0x2   :  { %116 = vmatpush3.msra.mxu0 %v20_v1  ;;  %9 = vst [vmem:[#allocation2] sm:$0x1] %v8_v3  ;;  %v17_v5 = vld [vmem:[%s171_s1] sm:$0xff] }
   0x3   :  { %117 = vmatprep.subr.mxu0 %v128_v0  ;;  %v16_v6 = vld [vmem:[%s173_s0] sm:$0xf] }
   0x4   :  { %118 = vmatpush3.msra.mxu0 %v19_v2 }
   0x5   :  { %119 = vmatprep.subr.mxu0 %v128_v0 }
   0x6   :  { %120 = vmatpush3.msra.mxu0 %v18_v4 }
   0x7   :  { %121 = vmatprep.subr.mxu0 %v128_v0 }
   0x8   :  { %122 = vmatpush3.msra.mxu0 %v17_v5 }
   0x9   :  { %124 = vmatmul.mubr.msk.f32.vlgmr.msra.gmra.mxu0 %vm28_vm1, %v16_v6  ;;  %v108_v7 = vld [vmem:[#allocation2] ss:$0 sm:$0xff] }
  0xc9   :  { %v98_v8 = vpop.f32.mrf.mxu0 }
  0xca   :  { %v99_v9 = vadd.f32 %v108_v7, %v98_v8 }
  0xcb   :  { %v125_v10 = vpop.f32.mrf.mxu0 }
  0xcc   :  { %103 = vst.msk [vmem:[%s174_s3] sm:$0xf] %vm102_vm2, %v99_v9 }

// kernel: a_conv_gnn_forward.16
= control target key start
LH: loop header
LB: loop body
LE: loop exit
PB: predicated region body
PF: predicated region fallthrough
CT: control target
= control target key end

     0   :  { %v118_v0 = vmov 0.0   ;;  %vm119_vm0 = vmmov 0   ;;  %vm24_vm1 = vcmask 130048   ;;  %vm98_vm2 = vcmask 781312   ;;  %s155_s1 = inlined_call_operand.vmem [shape: f32[16,96], index: 1, kind: input, shape index: {}]   ;;  %s156_s0 = inlined_call_operand.vmem [shape: f32[4,16], index: 0, kind: input, shape index: {}]   ;;  %s157_s2 = inlined_call_operand.vmem [shape: f32[1,96], index: 2, kind: input, shape index: {}]   ;;  %s158_s3 = inlined_call_operand.vmem [shape: f32[4,96], index: 3, kind: output, shape index: {}]  }
   0x1   :  { %109 = vmatprep.subr.mxu0 %v118_v0  ;;  %v16_v1 = vld [vmem:[%s155_s1 + $0x8] sm:$0xff]  ;;  %v15_v2 = vld [vmem:[%s155_s1] sm:$0xff]  ;;  %113 = vmatprep.mubr.msk.f32.mxu0 %vm119_vm0, %v118_v0 }
   0x2   :  { %110 = vmatpush3.msra.mxu0 %v16_v1  ;;  %v14_v3 = vld [vmem:[%s156_s0] sm:$0xf] }
   0x3   :  { %111 = vmatprep.subr.mxu0 %v118_v0  ;;  %v104_v4 = vld [vmem:[%s157_s2] ss:$0 sm:$0xff] }
   0x4   :  { %112 = vmatpush3.msra.mxu0 %v15_v2 }
   0x5   :  { %114 = vmatmul.mubr.msk.f32.vlgmr.msra.gmra.mxu0 %vm24_vm1, %v14_v3 }
  0xc5   :  { %v94_v5 = vpop.f32.mrf.mxu0 }
  0xc6   :  { %v95_v6 = vadd.f32 %v104_v4, %v94_v5 }
  0xc7   :  { %v115_v7 = vpop.f32.mrf.mxu0 }
  0xc8   :  { %99 = vst.msk [vmem:[%s158_s3] sm:$0xf] %vm98_vm2, %v95_v6 }

// kernel: a_conv_gnn_forward.17
= control target key start
LH: loop header
LB: loop body
LE: loop exit
PB: predicated region body
PF: predicated region fallthrough
CT: control target
= control target key end

     0   :  { %s431_s12 = smov 0   ;;  %s469_s0 = inlined_call_operand.vmem [shape: f32[2,2,96], index: 0, kind: input, shape index: {}]   ;;  %s470_s1 = inlined_call_operand.vmem [shape: f32[32,96], index: 1, kind: input, shape index: {}]   ;;  %s471_s2 = inlined_call_operand.vmem [shape: f32[1,96], index: 2, kind: input, shape index: {}]   ;;  %s472_s3 = inlined_call_operand.vmem [shape: f32[2,2,32], index: 3, kind: output, shape index: {}]  }
   0x1 LB: > { %s348_s13 = sadd.s32 4294967295, %s403_s12   ;;  %p352_p0 = scmp.ge.s32.totalorder %s403_s12, 1  ;;  %s403_s12 = sphi %s431_s12, %s13_s12  }
   0x2   : > { %p136_p1 = scmp.lt.s32.totalorder %s403_s12, 3 }
   0x4   : > { %p137_p2 = pnand %p352_p0, %p136_p1 }
   0x5   : > { %p158_p3 = scmp.lt.s32.totalorder (!%p137_p2), %s348_s13, 1  ;;  %p355_p4 = scmp.ne.s32.totalorder (!%p137_p2), %s348_s13, 0 }
   0x6   : > { %140 = sbr.rel (%p137_p2) target bundleno = 710 (0x2c6), region = 32 }
   0xb   : > { %s159_s14 = scalar_select %p158_p3, %s348_s13, 1 }
   0xc   : > { %169 = sbr.rel (%p355_p4) target bundleno = 19 (0x13), region = 36 }
   0xd   : > { %s353_s15 = sshll.u32 %s159_s14, 1 }
   0xe   : > { %s442_s18 = scalar_lea.vmem %s469_s0, %s353_s15  ;;  %s447_s21 = scalar_lea.vmem %s472_s3, %s353_s15 }
  0x11   : > { %vm170_vm0 = vcmask 254976   ;;  %v405_v0 = vmov 0.0  }
  0x12   : > { %171 = vst.msk [vmem:[#allocation2] sm:$0x3] %vm170_vm0, %v405_v0 }
  0x13 PF: > { %v177_v1 = vld [vmem:[%s470_s1 + $0x18] sm:$0xff]  ;;  %v406_v2 = vmov 0.0   ;;  %v176_v3 = vld [vmem:[%s470_s1 + $0x10] sm:$0xff]  ;;  %vm407_vm1 = vmmov 0   ;;  %v175_v4 = vld [vmem:[%s470_s1 + $0x8] sm:$0xff]  ;;  %vm185_vm2 = vcmask 261120  }
  0x14   : > { %366 = vmatprep.subr.mxu0 %v406_v2  ;;  %374 = vmatprep.mubr.msk.f32.mxu0 %vm407_vm1, %v406_v2  ;;  %v174_v5 = vld [vmem:[%s470_s1] sm:$0xff]  ;;  %s408_s5 = smov 64   ;;  %s409_s6 = smov 96   ;;  %vm292_vm3 = vcmask 254976  }
  0x15   : > { %367 = vmatpush3.msra.mxu0 %v177_v1  ;;  %v356_v7 = vld [vmem:[%s471_s2] ss:$0 sm:$0xff]  ;;  %s410_s7 = smov 32  }
  0x16   : > { %368 = vmatprep.subr.mxu0 %v406_v2  ;;  %v173_v11 = vld [vmem:[%s442_s18] sm:$0x3] }
  0x17   : > { %369 = vmatpush3.msra.mxu0 %v176_v3 }
  0x18   : > { %370 = vmatprep.subr.mxu0 %v406_v2 }
  0x19   : > { %371 = vmatpush3.msra.mxu0 %v175_v4  ;;  %v172_v6 = vld [vmem:[#allocation2] sm:$0x3] }
  0x1a   : > { %372 = vmatprep.subr.mxu0 %v406_v2 }
  0x1b   : > { %373 = vmatpush3.msra.mxu0 %v174_v5 }
  0x1c   : > { %375 = vmatmul.mubr.msk.f32.vlgmr.msra.gmra.mxu0 %vm185_vm2, %v172_v6 }
  0xdc   : > { %v255_v8 = vpop.f32.mrf.mxu0 }
  0xdd   : > { %v256_v9 = vadd.f32 %v356_v7, %v255_v8 }
  0xde   : > { %v376_v10 = vpop.f32.mrf.mxu0 }
  0xdf   : > { %267 = vrot.lane.b32.xlu0 %v256_v9, %s408_s5  ;;  %v259_v12 = vadd.f32 %v256_v9, %v173_v11 }
  0xe1   : > { %v358_v13 = vmul.f32 -1.442695, %v259_v12 }
  0xe3   : > { %391 = vpow2.f32 %v358_v13 }
  0xf0   : > { %v392_v14 = vpop.eup %391 }
  0xf1   : > { %v263_v15 = vadd.f32 1.0, %v392_v14 }
  0xf3   : > { %393 = vrcp.f32 %v263_v15 }
 0x100   : > { %v394_v16 = vpop.eup %393 }
 0x101   : > { %v277_v23 = vsub.f32 1.0, %v394_v16 }
 0x151   : > { %v268_v17 = vpop.permute.xlu0 %267 }
 0x152   : > { %v270_v18 = vmul.f32 %v394_v16, %v268_v17 }
 0x154   : > { %272 = vrot.lane.b32.xlu0 %v270_v18, %s408_s5 }
 0x1c6   : > { %v273_v19 = vpop.permute.xlu0 %272 }
 0x1c7   : > { %v275_v20 = vadd.f32 %v273_v19, %v173_v11 }
 0x1c9   : > { %395 = vtanh.f32 %v275_v20 }
 0x1d6   : > { %v396_v21 = vpop.eup %395 }
 0x1d7   : > { %279 = vrot.lane.b32.xlu1 %v396_v21, %s409_s6 }
 0x1db   : > { %283 = vrot.lane.b32.xlu1 %v172_v6, %s410_s7 }
 0x249   : > { %v280_v22 = vpop.permute.xlu1 %279 }
 0x24a   : > { %v282_v25 = vmul.f32 %v280_v22, %v277_v23 }
 0x24d   : > { %v284_v24 = vpop.permute.xlu1 %283 }
 0x24e   : > { %v286_v26 = vmul.f32 %v394_v16, %v284_v24 }
 0x250   : > { %v287_v27 = vadd.f32 %v286_v26, %v282_v25 }
 0x252   : > { %289 = vrot.lane.b32.xlu0 %v287_v27, %s409_s6 }
 0x2c4   : > { %v290_v28 = vpop.permute.xlu0 %289 }
 0x2c5   : > { %293 = vst.msk [vmem:[#allocation2] sm:$0x3] %vm292_vm3, %v290_v28  ;;  %294 = vst.msk [vmem:[%s447_s21] sm:$0x3] %vm292_vm3, %v290_v28 }
 0x2c6 PF: > { %s13_s12 = sadd.s32 1, %s403_s12  }
 0x2c7   : > { %p10_p5 = scmp.ge.s32.totalorder %s13_s12, 4  }
 0x2c9   :  { %12 = sbr.rel (!%p10_p5) target bundleno = 1 (0x1), region = 66 }

// kernel: a_conv_gnn_forward.11
= control target key start
LH: loop header
LB: loop body
LE: loop exit
PB: predicated region body
PF: predicated region fallthrough
CT: control target
= control target key end

     0   :  { %vm25_vm0 = vcmask 130048   ;;  %vm107_vm1 = vcmask 785408   ;;  %s169_s1 = inlined_call_operand.vmem [shape: f32[16,96], index: 1, kind: input, shape index: {}]   ;;  %s170_s0 = inlined_call_operand.vmem [shape: f32[16,16], index: 0, kind: input, shape index: {}]   ;;  %s171_s2 = inlined_call_operand.vmem [shape: f32[1,96], index: 2, kind: input, shape index: {}]   ;;  %s172_s3 = inlined_call_operand.vmem [shape: f32[16,96], index: 3, kind: output, shape index: {}]  }
   0x1   :  { %v17_v0 = vld [vmem:[%s169_s1 + $0x8] sm:$0xff]  ;;  %v16_v1 = vld [vmem:[%s169_s1] sm:$0xff] }
   0x2   :  { %v14_v2 = vld [vmem:[%s170_s0] sm:$0xff]  ;;  %121 = vmatprep.subr.mxu0 %v17_v0  ;;  %v15_v3 = vld [vmem:[%s170_s0 + $0x8] sm:$0xff] }
   0x3   :  { %125 = vmatprep.mubr.msk.f32.mxu0 %vm25_vm0, %v14_v2  ;;  %122 = vmatpush3.msra.mxu0 %v17_v0  ;;  %v114_v4 = vld [vmem:[%s171_s2] ss:$0 sm:$0xff] }
   0x4   :  { %123 = vmatprep.subr.mxu0 %v16_v1 }
   0x5   :  { %124 = vmatpush3.msra.mxu0 %v16_v1 }
   0x6   :  { %126 = vmatmul.mubr.msk.f32.vlgmr.msra.gmra.mxu0 %vm25_vm0, %v15_v3 }
  0xc6   :  { %v127_v5 = vpop.f32.mrf.mxu0 }
  0xc7   :  { %v104_v6 = vadd.f32 %v127_v5, %v114_v4 }
  0xc8   :  { %v98_v7 = vpop.f32.mrf.mxu0 }
  0xc9   :  { %109 = vst.msk [vmem:[%s172_s3 + $0x8] sm:$0xff] %vm107_vm1, %v104_v6  ;;  %v99_v8 = vadd.f32 %v114_v4, %v98_v7 }
  0xcb   :  { %108 = vst.msk [vmem:[%s172_s3] sm:$0xff] %vm107_vm1, %v99_v8 }

// kernel: a_conv_gnn_forward.19
= control target key start
LH: loop header
LB: loop body
LE: loop exit
PB: predicated region body
PF: predicated region fallthrough
CT: control target
= control target key end

     0   :  { %vm29_vm0 = vcmask 261120   ;;  %vm111_vm1 = vcmask 7168   ;;  %s187_s1 = inlined_call_operand.vmem [shape: f32[32,1], index: 1, kind: input, shape index: {}]   ;;  %s188_s0 = inlined_call_operand.vmem [shape: f32[16,32], index: 0, kind: input, shape index: {}]   ;;  %s189_s2 = inlined_call_operand.<no memory space> [shape: f32[1,1], index: 2, kind: input, shape index: {}]   ;;  %s190_s3 = inlined_call_operand.vmem [shape: f32[16,1], index: 3, kind: output, shape index: {}]  }
   0x1   :  { %v21_v0 = vld [vmem:[%s187_s1 + $0x18] sm:$0xff]  ;;  %v20_v1 = vld [vmem:[%s187_s1 + $0x10] sm:$0xff]  ;;  %v8_v2 = vstv %s189_s2  ;;  %v16_v3 = vld [vmem:[%s188_s0] sm:$0xff] }
   0x2   :  { %127 = vmatprep.subr.mxu0 %v21_v0  ;;  %9 = vst [vmem:[#allocation2] sm:$0x1] %v8_v2  ;;  %v19_v4 = vld [vmem:[%s187_s1 + $0x8] sm:$0xff]  ;;  %135 = vmatprep.mubr.msk.f32.mxu0 %vm29_vm0, %v16_v3  ;;  %v18_v5 = vld [vmem:[%s187_s1] sm:$0xff] }
   0x3   :  { %128 = vmatpush3.msra.mxu0 %v21_v0  ;;  %v17_v6 = vld [vmem:[%s188_s0 + $0x8] sm:$0xff] }
   0x4   :  { %129 = vmatprep.subr.mxu0 %v20_v1 }
   0x5   :  { %130 = vmatpush3.msra.mxu0 %v20_v1 }
   0x6   :  { %131 = vmatprep.subr.mxu0 %v19_v4 }
   0x7   :  { %132 = vmatpush3.msra.mxu0 %v19_v4 }
   0x8   :  { %133 = vmatprep.subr.mxu0 %v18_v5 }
   0x9   :  { %134 = vmatpush3.msra.mxu0 %v18_v5  ;;  %v118_v7 = vld [vmem:[#allocation2] ss:$0 sm:$0xff] }
   0xa   :  { %136 = vmatmul.mubr.msk.f32.vlgmr.msra.gmra.mxu0 %vm29_vm0, %v17_v6 }
  0xca   :  { %v137_v8 = vpop.f32.mrf.mxu0 }
  0xcb   :  { %v108_v9 = vadd.f32 %v137_v8, %v118_v7 }
  0xcc   :  { %v102_v10 = vpop.f32.mrf.mxu0 }
  0xcd   :  { %113 = vst.msk [vmem:[%s190_s3 + $0x8] sm:$0xff] %vm111_vm1, %v108_v9  ;;  %v103_v11 = vadd.f32 %v118_v7, %v102_v10 }
  0xcf   :  { %112 = vst.msk [vmem:[%s190_s3] sm:$0xff] %vm111_vm1, %v103_v11 }

// kernel: a_conv_gnn_forward.12
= control target key start
LH: loop header
LB: loop body
LE: loop exit
PB: predicated region body
PF: predicated region fallthrough
CT: control target
= control target key end

     0   :  { %s431_s12 = smov 0   ;;  %s469_s0 = inlined_call_operand.vmem [shape: f32[8,2,96], index: 0, kind: input, shape index: {}]   ;;  %s470_s1 = inlined_call_operand.vmem [shape: f32[32,96], index: 1, kind: input, shape index: {}]   ;;  %s471_s2 = inlined_call_operand.vmem [shape: f32[1,96], index: 2, kind: input, shape index: {}]   ;;  %s472_s3 = inlined_call_operand.vmem [shape: f32[8,2,32], index: 3, kind: output, shape index: {}]  }
   0x1 LB: > { %s348_s13 = sadd.s32 4294967295, %s403_s12   ;;  %p352_p0 = scmp.ge.s32.totalorder %s403_s12, 1  ;;  %s403_s12 = sphi %s431_s12, %s13_s12  }
   0x2   : > { %p136_p1 = scmp.lt.s32.totalorder %s403_s12, 9 }
   0x4   : > { %p137_p2 = pnand %p352_p0, %p136_p1 }
   0x5   : > { %p158_p3 = scmp.lt.s32.totalorder (!%p137_p2), %s348_s13, 7  ;;  %p355_p4 = scmp.ne.s32.totalorder (!%p137_p2), %s348_s13, 0 }
   0x6   : > { %140 = sbr.rel (%p137_p2) target bundleno = 710 (0x2c6), region = 32 }
   0xb   : > { %s159_s14 = scalar_select %p158_p3, %s348_s13, 7 }
   0xc   : > { %169 = sbr.rel (%p355_p4) target bundleno = 19 (0x13), region = 36 }
   0xd   : > { %s353_s15 = sshll.u32 %s159_s14, 1 }
   0xe   : > { %s442_s18 = scalar_lea.vmem %s469_s0, %s353_s15  ;;  %s447_s21 = scalar_lea.vmem %s472_s3, %s353_s15 }
  0x11   : > { %vm170_vm0 = vcmask 254976   ;;  %v405_v0 = vmov 0.0  }
  0x12   : > { %171 = vst.msk [vmem:[#allocation2] sm:$0x3] %vm170_vm0, %v405_v0 }
  0x13 PF: > { %v177_v1 = vld [vmem:[%s470_s1 + $0x18] sm:$0xff]  ;;  %v406_v2 = vmov 0.0   ;;  %v176_v3 = vld [vmem:[%s470_s1 + $0x10] sm:$0xff]  ;;  %vm407_vm1 = vmmov 0   ;;  %v175_v4 = vld [vmem:[%s470_s1 + $0x8] sm:$0xff]  ;;  %vm185_vm2 = vcmask 261120  }
  0x14   : > { %366 = vmatprep.subr.mxu0 %v406_v2  ;;  %374 = vmatprep.mubr.msk.f32.mxu0 %vm407_vm1, %v406_v2  ;;  %v174_v5 = vld [vmem:[%s470_s1] sm:$0xff]  ;;  %s408_s5 = smov 64   ;;  %s409_s6 = smov 96   ;;  %vm292_vm3 = vcmask 254976  }
  0x15   : > { %367 = vmatpush3.msra.mxu0 %v177_v1  ;;  %v356_v7 = vld [vmem:[%s471_s2] ss:$0 sm:$0xff]  ;;  %s410_s7 = smov 32  }
  0x16   : > { %368 = vmatprep.subr.mxu0 %v406_v2  ;;  %v173_v11 = vld [vmem:[%s442_s18] sm:$0x3] }
  0x17   : > { %369 = vmatpush3.msra.mxu0 %v176_v3 }
  0x18   : > { %370 = vmatprep.subr.mxu0 %v406_v2 }
  0x19   : > { %371 = vmatpush3.msra.mxu0 %v175_v4  ;;  %v172_v6 = vld [vmem:[#allocation2] sm:$0x3] }
  0x1a   : > { %372 = vmatprep.subr.mxu0 %v406_v2 }
  0x1b   : > { %373 = vmatpush3.msra.mxu0 %v174_v5 }
  0x1c   : > { %375 = vmatmul.mubr.msk.f32.vlgmr.msra.gmra.mxu0 %vm185_vm2, %v172_v6 }
  0xdc   : > { %v255_v8 = vpop.f32.mrf.mxu0 }
  0xdd   : > { %v256_v9 = vadd.f32 %v356_v7, %v255_v8 }
  0xde   : > { %v376_v10 = vpop.f32.mrf.mxu0 }
  0xdf   : > { %267 = vrot.lane.b32.xlu0 %v256_v9, %s408_s5  ;;  %v259_v12 = vadd.f32 %v256_v9, %v173_v11 }
  0xe1   : > { %v358_v13 = vmul.f32 -1.442695, %v259_v12 }
  0xe3   : > { %391 = vpow2.f32 %v358_v13 }
  0xf0   : > { %v392_v14 = vpop.eup %391 }
  0xf1   : > { %v263_v15 = vadd.f32 1.0, %v392_v14 }
  0xf3   : > { %393 = vrcp.f32 %v263_v15 }
 0x100   : > { %v394_v16 = vpop.eup %393 }
 0x101   : > { %v277_v23 = vsub.f32 1.0, %v394_v16 }
 0x151   : > { %v268_v17 = vpop.permute.xlu0 %267 }
 0x152   : > { %v270_v18 = vmul.f32 %v394_v16, %v268_v17 }
 0x154   : > { %272 = vrot.lane.b32.xlu0 %v270_v18, %s408_s5 }
 0x1c6   : > { %v273_v19 = vpop.permute.xlu0 %272 }
 0x1c7   : > { %v275_v20 = vadd.f32 %v273_v19, %v173_v11 }
 0x1c9   : > { %395 = vtanh.f32 %v275_v20 }
 0x1d6   : > { %v396_v21 = vpop.eup %395 }
 0x1d7   : > { %279 = vrot.lane.b32.xlu1 %v396_v21, %s409_s6 }
 0x1db   : > { %283 = vrot.lane.b32.xlu1 %v172_v6, %s410_s7 }
 0x249   : > { %v280_v22 = vpop.permute.xlu1 %279 }
 0x24a   : > { %v282_v25 = vmul.f32 %v280_v22, %v277_v23 }
 0x24d   : > { %v284_v24 = vpop.permute.xlu1 %283 }
 0x24e   : > { %v286_v26 = vmul.f32 %v394_v16, %v284_v24 }
 0x250   : > { %v287_v27 = vadd.f32 %v286_v26, %v282_v25 }
 0x252   : > { %289 = vrot.lane.b32.xlu0 %v287_v27, %s409_s6 }
 0x2c4   : > { %v290_v28 = vpop.permute.xlu0 %289 }
 0x2c5   : > { %293 = vst.msk [vmem:[#allocation2] sm:$0x3] %vm292_vm3, %v290_v28  ;;  %294 = vst.msk [vmem:[%s447_s21] sm:$0x3] %vm292_vm3, %v290_v28 }
 0x2c6 PF: > { %s13_s12 = sadd.s32 1, %s403_s12  }
 0x2c7   : > { %p10_p5 = scmp.ge.s32.totalorder %s13_s12, 10  }
 0x2c9   :  { %12 = sbr.rel (!%p10_p5) target bundleno = 1 (0x1), region = 66 }

// kernel: a_conv_gnn_forward.13
= control target key start
LH: loop header
LB: loop body
LE: loop exit
PB: predicated region body
PF: predicated region fallthrough
CT: control target
= control target key end

     0   :  { %v126_v0 = vmov 0.0   ;;  %vm127_vm0 = vmmov 0   ;;  %vm26_vm1 = vcmask 261120   ;;  %vm100_vm2 = vcmask 254976   ;;  %s169_s1 = inlined_call_operand.vmem [shape: f32[32,32], index: 1, kind: input, shape index: {}]   ;;  %s170_s0 = inlined_call_operand.vmem [shape: f32[2,32], index: 0, kind: input, shape index: {}]   ;;  %s171_s2 = inlined_call_operand.vmem [shape: f32[1,32], index: 2, kind: input, shape index: {}]   ;;  %s172_s3 = inlined_call_operand.vmem [shape: f32[2,32], index: 3, kind: output, shape index: {}]  }
   0x1   :  { %113 = vmatprep.subr.mxu0 %v126_v0  ;;  %v18_v1 = vld [vmem:[%s169_s1 + $0x18] sm:$0xff]  ;;  %v17_v2 = vld [vmem:[%s169_s1 + $0x10] sm:$0xff]  ;;  %121 = vmatprep.mubr.msk.f32.mxu0 %vm127_vm0, %v126_v0  ;;  %v16_v3 = vld [vmem:[%s169_s1 + $0x8] sm:$0xff] }
   0x2   :  { %114 = vmatpush3.msra.mxu0 %v18_v1  ;;  %v15_v4 = vld [vmem:[%s169_s1] sm:$0xff] }
   0x3   :  { %115 = vmatprep.subr.mxu0 %v126_v0  ;;  %v14_v5 = vld [vmem:[%s170_s0] sm:$0x3] }
   0x4   :  { %116 = vmatpush3.msra.mxu0 %v17_v2  ;;  %v106_v6 = vld [vmem:[%s171_s2] ss:$0 sm:$0xff] }
   0x5   :  { %117 = vmatprep.subr.mxu0 %v126_v0 }
   0x6   :  { %118 = vmatpush3.msra.mxu0 %v16_v3 }
   0x7   :  { %119 = vmatprep.subr.mxu0 %v126_v0 }
   0x8   :  { %120 = vmatpush3.msra.mxu0 %v15_v4 }
   0x9   :  { %122 = vmatmul.mubr.msk.f32.vlgmr.msra.gmra.mxu0 %vm26_vm1, %v14_v5 }
  0xc9   :  { %v96_v7 = vpop.f32.mrf.mxu0 }
  0xca   :  { %v97_v8 = vadd.f32 %v106_v6, %v96_v7 }
  0xcb   :  { %v123_v9 = vpop.f32.mrf.mxu0 }
  0xcc   :  { %101 = vst.msk [vmem:[%s172_s3] sm:$0x3] %vm100_vm2, %v97_v8 }

// kernel: a_conv_gnn_forward.21
= control target key start
LH: loop header
LB: loop body
LE: loop exit
PB: predicated region body
PF: predicated region fallthrough
CT: control target
= control target key end

     0   :  { %s1487_s29 = smov 0   ;;  %s1806_s0 = inlined_call_operand.vmem [shape: f32[2,64], index: 0, kind: input, shape index: {}]   ;;  %s1807_s1 = inlined_call_operand.vmem [shape: f32[5,2,192], index: 1, kind: input, shape index: {}]   ;;  %s1808_s2 = inlined_call_operand.vmem [shape: f32[8,2,32], index: 2, kind: input, shape index: {}]   ;;  %s1809_s3 = inlined_call_operand.vmem [shape: f32[8,2], index: 3, kind: input, shape index: {}]   ;;  %s1810_s4 = inlined_call_operand.vmem [shape: f32[64,1], index: 4, kind: input, shape index: {}]   ;;  %s1811_s5 = inlined_call_operand.vmem [shape: f32[2,2,32], index: 5, kind: input, shape index: {}]   ;;  %s1812_s6 = inlined_call_operand.vmem [shape: f32[2,2], index: 6, kind: input, shape index: {}]   ;;  %s1813_s7 = inlined_call_operand.vmem [shape: f32[64,1], index: 7, kind: input, shape index: {}]   ;;  %s1814_s8 = inlined_call_operand.vmem [shape: f32[32,192], index: 8, kind: input, shape index: {}]   ;;  %s1815_s9 = inlined_call_operand.vmem [shape: f32[32,192], index: 9, kind: input, shape index: {}]   ;;  %s1816_s10 = inlined_call_operand.vmem [shape: f32[64,192], index: 10, kind: input, shape index: {}]   ;;  %s1817_s11 = inlined_call_operand.vmem [shape: f32[1,192], index: 11, kind: input, shape index: {}]   ;;  %s1818_s12 = inlined_call_operand.vmem [shape: f32[64,40], index: 12, kind: input, shape index: {}]   ;;  %s1819_s13 = inlined_call_operand.vmem [shape: f32[1,40], index: 13, kind: input, shape index: {}]   ;;  %s1820_s14 = inlined_call_operand.vmem [shape: f32[5,2,40], index: 14, kind: output, shape index: {}]  }
   0x1 LB: > { %s1268_s30 = sadd.s32 4294967295, %s1406_s29   ;;  %p1272_p0 = scmp.ge.s32.totalorder %s1406_s29, 1  ;;  %s1406_s29 = sphi %s1487_s29, %s24_s29  }
   0x2   : > { %p412_p1 = scmp.lt.s32.totalorder %s1406_s29, 6 }
   0x4   : > { %p413_p2 = pnand %p1272_p0, %p412_p1 }
   0x5   : > { %p457_p3 = scmp.lt.s32.totalorder (!%p413_p2), %s1268_s30, 4  ;;  %p1276_p4 = scmp.ne.s32.totalorder (!%p413_p2), %s1268_s30, 0 }
   0x6   : > { %416 = sbr.rel (%p413_p2) target bundleno = 1240 (0x4d8), region = 76 }
   0xb   : > { %s458_s15 = scalar_select %p457_p3, %s1268_s30, 4 }
   0xc   : > { %469 = sbr.rel (%p1276_p4) target bundleno = 19 (0x13), region = 80 }
   0xd   : > { %s1288_s16 = sshll.u32 %s458_s15, 2  ;;  %s1275_s17 = sshll.u32 %s458_s15, 1 }
   0xe   : > { %s1498_s20 = scalar_lea.vmem %s1807_s1, %s1288_s16  ;;  %s1503_s23 = scalar_lea.vmem %s1820_s14, %s1275_s17 }
  0x11   : > { %v470_v0 = vld [vmem:[%s1806_s0] sm:$0x3]  ;;  %vm471_vm0 = vcmask 517120  }
  0x12   : > { %472 = vst.msk [vmem:[#allocation2] sm:$0x3] %vm471_vm0, %v470_v0 }
  0x13 PF: > { %v699_v1 = vld [vmem:[%s1813_s7 + $0x38] sm:$0xff]  ;;  %v1408_v3 = vmov 0.0   ;;  %v698_v4 = vld [vmem:[%s1813_s7 + $0x30] sm:$0xff]  ;;  %v697_v6 = vld [vmem:[%s1813_s7 + $0x28] sm:$0xff]  ;;  %vm1409_vm1 = vmmov 0   ;;  %vm490_vm2 = vcmask 523264   ;;  %v569_v24 = vlaneseq }
  0x14   : > { %v489_v2 = vld [vmem:[%s1810_s4 + $0x38] sm:$0xff]  ;;  %1335 = vmatprep.subr.mxu1 %v1408_v3  ;;  %1316 = vmatprep.subr.mxu0 %v1408_v3  ;;  %v488_v5 = vld [vmem:[%s1810_s4 + $0x30] sm:$0xff]  ;;  %v487_v7 = vld [vmem:[%s1810_s4 + $0x28] sm:$0xff]  ;;  %v1410_v19 = vmov 0   ;;  %vm782_vm3 = vcmask 9216   ;;  %vm590_vm4 = vcmask 15360  }
  0x15   : > { %1336 = vmatpush3.msra.mxu1 %v699_v1  ;;  %1317 = vmatpush3.msra.mxu0 %v489_v2  ;;  %v696_v8 = vld [vmem:[%s1813_s7 + $0x20] sm:$0xff]  ;;  %v695_v10 = vld [vmem:[%s1813_s7 + $0x18] sm:$0xff]  ;;  %v694_v12 = vld [vmem:[%s1813_s7 + $0x10] sm:$0xff]  ;;  %v570_v25 = vand.u32 127, %v569_v24  ;;  %v1584_v26 = vshrl.u32 %v569_v24, 7  ;;  %s1411_s16 = smov 64  }
  0x16   : > { %1337 = vmatprep.subr.mxu1 %v1408_v3  ;;  %1318 = vmatprep.subr.mxu0 %v1408_v3  ;;  %v486_v9 = vld [vmem:[%s1810_s4 + $0x20] sm:$0xff]  ;;  %v485_v11 = vld [vmem:[%s1810_s4 + $0x18] sm:$0xff]  ;;  %v484_v13 = vld [vmem:[%s1810_s4 + $0x10] sm:$0xff]  ;;  %vm674_vm5 = vcmask 254976   ;;  %vm837_vm6 = vcmask 261120   ;;  %vm1124_vm7 = vcmask 517120  }
  0x17   : > { %1338 = vmatpush3.msra.mxu1 %v698_v4  ;;  %1319 = vmatpush3.msra.mxu0 %v488_v5  ;;  %v693_v14 = vld [vmem:[%s1813_s7 + $0x8] sm:$0xff]  ;;  %v692_v16 = vld [vmem:[%s1813_s7] sm:$0xff]  ;;  %v573_v27 = vsub.s32 %v570_v25, %v1584_v26  ;;  %vm1213_vm8 = vcmask 320512  }
  0x18   : > { %1339 = vmatprep.subr.mxu1 %v1408_v3  ;;  %1320 = vmatprep.subr.mxu0 %v1408_v3  ;;  %v483_v15 = vld [vmem:[%s1810_s4 + $0x8] sm:$0xff]  ;;  %v482_v18 = vld [vmem:[%s1810_s4] sm:$0xff] }
  0x19   : > { %1340 = vmatpush3.msra.mxu1 %v697_v6  ;;  %1321 = vmatpush3.msra.mxu0 %v487_v7  ;;  %v1569_v17 = vld [vmem:[#allocation2] sm:$0x3] }
  0x1a   : > { %1341 = vmatprep.subr.mxu1 %v1408_v3  ;;  %1322 = vmatprep.subr.mxu0 %v1408_v3  ;;  %v770_v28 = vld [vmem:[%s1812_s6] sm:$0x3] }
  0x1b   : > { %1342 = vmatpush3.msra.mxu1 %v696_v8  ;;  %1323 = vmatpush3.msra.mxu0 %v486_v9  ;;  %v564_v32 = vld [vmem:[%s1809_s3] sm:$0xff]  ;;  %v836_v9 = vld [vmem:[%s1815_s9 + $0x38] sm:$0xff] }
  0x1c   : > { %1343 = vmatprep.subr.mxu1 %v1408_v3  ;;  %1324 = vmatprep.subr.mxu0 %v1408_v3 }
  0x1d   : > { %1344 = vmatpush3.msra.mxu1 %v695_v10  ;;  %1325 = vmatpush3.msra.mxu0 %v485_v11  ;;  %v835_v10 = vld [vmem:[%s1815_s9 + $0x30] sm:$0xff]  ;;  %v834_v11 = vld [vmem:[%s1815_s9 + $0x28] sm:$0xff] }
  0x1e   : > { %1345 = vmatprep.subr.mxu1 %v1408_v3  ;;  %1326 = vmatprep.subr.mxu0 %v1408_v3 }
  0x1f   : > { %1346 = vmatpush3.msra.mxu1 %v694_v12  ;;  %1327 = vmatpush3.msra.mxu0 %v484_v13  ;;  %v833_v12 = vld [vmem:[%s1815_s9 + $0x20] sm:$0xff]  ;;  %v832_v13 = vld [vmem:[%s1815_s9 + $0x18] sm:$0xff] }
  0x20   : > { %1347 = vmatprep.subr.mxu1 %v1408_v3  ;;  %1351 = vmatprep.mubr.msk.f32.mxu1 %vm1409_vm1, %v1408_v3 }
  0x21   : > { %1348 = vmatpush3.msra.mxu1 %v693_v14  ;;  %1328 = vmatprep.subr.mxu0 %v1408_v3  ;;  %v831_v14 = vld [vmem:[%s1815_s9 + $0x10] sm:$0xff] }
  0x22   : > { %1349 = vmatprep.subr.mxu1 %v1408_v3  ;;  %1329 = vmatpush3.msra.mxu0 %v483_v15  ;;  %v1616_v15 = vsub.s32 0, %v1584_v26 }
  0x23   : > { %1350 = vmatpush3.msra.mxu1 %v692_v16  ;;  %1330 = vmatprep.subr.mxu0 %v1408_v3  ;;  %v830_v16 = vld [vmem:[%s1815_s9 + $0x8] sm:$0xff] }
  0x24   : > { %1352 = vmatmul.mubr.msk.f32.vlgmr.msra.gmra.mxu1 %vm490_vm2, %v1569_v17  ;;  %1331 = vmatpush3.msra.mxu0 %v482_v18 }
  0x25   : > { %1332 = vmatprep.mubr.msk.f32.mxu0 %vm1409_vm1, %v1408_v3  ;;  %1385 = vset.pattern.permute.xlu0 %v1410_v19  ;;  %v829_v19 = vld [vmem:[%s1815_s9] sm:$0xff] }
  0x26   : > { %1333 = vmatmul.mubr.msk.f32.vlgmr.msra.gmra.mxu0 %vm490_vm2, %v1569_v17  ;;  %979 = vmatprep.mubr.f32.mxu1 %v1408_v3 }
  0x27   : > { %905 = vmatprep.mubr.f32.mxu0 %v1408_v3  ;;  %865 = vmatprep.subr.mxu0 %v836_v9 }
  0x28   : > { %866 = vmatpush1.msra.mxu0 %v835_v10 }
  0x29   : > { %867 = vmatprep.subr.mxu0 %v834_v11  ;;  %v1011_v11 = vld [vmem:[%s1816_s10 + $0x58] sm:$0xff] }
  0x2a   : > { %868 = vmatpush1.msra.mxu0 %v833_v12 }
  0x2b   : > { %869 = vmatprep.subr.mxu0 %v832_v13 }
  0x2c   : > { %870 = vmatpush1.msra.mxu0 %v831_v14 }
  0x2d   : > { %871 = vmatprep.subr.mxu0 %v830_v16  ;;  %v1010_v16 = vld [vmem:[%s1816_s10 + $0x50] sm:$0xff] }
  0x2e   : > { %872 = vmatpush1.msra.mxu0 %v829_v19 }
  0xe4   : > { %v766_v20 = vpop.f32.mrf.mxu1 }
  0xe5   : > { %773 = vperm.xlu0 %1385, %v766_v20  }
  0xe6   : > { %v1353_v21 = vpop.f32.mrf.mxu1  ;;  %v560_v22 = vpop.f32.mrf.mxu0 }
  0xe7   : > { %v1015_v21 = vld [vmem:[%s1816_s10 + $0x78] sm:$0xff] }
  0xe8   : > { %v1334_v23 = vpop.f32.mrf.mxu0  ;;  %1044 = vmatprep.subr.mxu0 %v1015_v21  ;;  %v1009_v21 = vld [vmem:[%s1816_s10 + $0x48] sm:$0xff] }
  0xe9   : > { %567 = vperm.xlu0 %1385, %v560_v22   ;;  %v1629_v23 = vsub.s32 1, %v1584_v26 }
 0x160   : > { %v774_v29 = vpop.permute.xlu0 %773 }
 0x161   : > { %v778_v30 = vrot.slane %v774_v29, %v573_v27  ;;  %v626_v29 = vsub.s32 2, %v1584_v26 }
 0x163   : > { %v780_v31 = vadd.f32 %v778_v30, %v770_v28  ;;  %v828_v30 = vld [vmem:[%s1814_s8 + $0x38] sm:$0xff] }
 0x164   : > { %v568_v33 = vpop.permute.xlu0 %567  ;;  %939 = vmatprep.subr.mxu1 %v828_v30 }
 0x165   : > { %v781_v34 = vmax.f32 %v780_v31, 0.0  ;;  %v574_v35 = vrot.slane %v568_v33, %v573_v27  ;;  %v827_v31 = vld [vmem:[%s1814_s8 + $0x30] sm:$0xff] }
 0x166   : > { %940 = vmatpush1.msra.mxu1 %v827_v31 }
 0x167   : > { %v783_v36 = vsel %vm782_vm3, %v781_v34, -inf  ;;  %v588_v37 = vadd.f32 %v574_v35, %v564_v32  ;;  %v640_v35 = vsub.s32 4, %v1584_v26 }
 0x168   : > { %v784_v38 = vrot.slane %v783_v36, 4 }
 0x169   : > { %v589_v39 = vmax.f32 %v588_v37, 0.0  ;;  %v825_v37 = vld [vmem:[%s1814_s8 + $0x20] sm:$0xff] }
 0x16a   : > { %v785_v40 = vmax.f32 %v783_v36, %v784_v38  ;;  %v826_v36 = vld [vmem:[%s1814_s8 + $0x28] sm:$0xff]  ;;  %v824_v38 = vld [vmem:[%s1814_s8 + $0x18] sm:$0xff] }
 0x16b   : > { %v591_v41 = vsel %vm590_vm4, %v589_v39, -inf  ;;  %941 = vmatprep.subr.mxu1 %v826_v36 }
 0x16c   : > { %v786_v42 = vrot.slane %v785_v40, 2  ;;  %v592_v43 = vrot.slane %v591_v41, 4  ;;  %942 = vmatpush1.msra.mxu1 %v825_v37  ;;  %v1005_v37 = vld [vmem:[%s1816_s10 + $0x28] sm:$0xff] }
 0x16d   : > { %943 = vmatprep.subr.mxu1 %v824_v38 }
 0x16e   : > { %v787_v44 = vmax.f32 %v785_v40, %v786_v42  ;;  %v593_v45 = vmax.f32 %v591_v41, %v592_v43  ;;  %v647_v42 = vsub.s32 5, %v1584_v26  ;;  %v654_v43 = vsub.s32 6, %v1584_v26 }
 0x170   : > { %v788_v46 = vrot.slane %v787_v44, 1  ;;  %v594_v47 = vrot.slane %v593_v45, 2 }
 0x172   : > { %v789_v48 = vmax.f32 %v787_v44, %v788_v46  ;;  %v595_v49 = vmax.f32 %v593_v45, %v594_v47  ;;  %v822_v44 = vld [vmem:[%s1814_s8 + $0x8] sm:$0xff]  ;;  %v821_v45 = vld [vmem:[%s1814_s8] sm:$0xff] }
 0x174   : > { %v790_v50 = vsub.f32 %v781_v34, %v789_v48  ;;  %v596_v51 = vrot.slane %v595_v49, 1  ;;  %v633_v34 = vsub.s32 3, %v1584_v26  ;;  %v661_v48 = vsub.s32 7, %v1584_v26  ;;  %v691_v26 = vld [vmem:[%s1811_s5 + $0x2] sm:$0x3] }
 0x176   : > { %v791_v52 = vmul.f32 1.442695, %v790_v50  ;;  %v597_v53 = vmax.f32 %v595_v49, %v596_v51  ;;  %v690_v50 = vld [vmem:[%s1811_s5] sm:$0x3] }
 0x178   : > { %1386 = vpow2.f32 %v791_v52  ;;  %v598_v54 = vsub.f32 %v589_v39, %v597_v53  ;;  %v823_v39 = vld [vmem:[%s1814_s8 + $0x10] sm:$0xff] }
 0x179   : > { %944 = vmatpush1.msra.mxu1 %v823_v39  ;;  %v481_v39 = vld [vmem:[%s1808_s2 + $0xe] sm:$0x3] }
 0x17a   : > { %v599_v55 = vmul.f32 1.442695, %v598_v54  ;;  %945 = vmatprep.subr.mxu1 %v822_v44  ;;  %v474_v54 = vld [vmem:[%s1808_s2] sm:$0x3] }
 0x17b   : > { %946 = vmatpush1.msra.mxu1 %v821_v45  ;;  %v1002_v45 = vld [vmem:[%s1816_s10 + $0x10] sm:$0xff] }
 0x17c   : > { %1388 = vpow2.f32 %v599_v55  ;;  %1354 = vmatprep.subr.mxu1 %v1408_v3 }
 0x185   : > { %v1387_v56 = vpop.eup %1386 }
 0x186   : > { %v793_v57 = vsel %vm782_vm3, %v1387_v56, 0.0 }
 0x187   : > { %v794_v58 = vrot.slane %v793_v57, 4 }
 0x189   : > { %v1389_v59 = vpop.eup %1388  ;;  %v795_v60 = vadd.f32 %v794_v58, %v793_v57  ;;  %v475_v57 = vld [vmem:[%s1808_s2 + $0x2] sm:$0x3]  ;;  %v476_v58 = vld [vmem:[%s1808_s2 + $0x4] sm:$0x3] }
 0x18a   : > { %v601_v61 = vsel %vm590_vm4, %v1389_v59, 0.0 }
 0x18b   : > { %v796_v62 = vrot.slane %v795_v60, 2  ;;  %v602_v63 = vrot.slane %v601_v61, 4 }
 0x18d   : > { %v797_v0 = vadd.f32 %v796_v62, %v795_v60  ;;  %v603_v1 = vadd.f32 %v602_v63, %v601_v61 }
 0x18f   : > { %v798_v2 = vrot.slane %v797_v0, 1  ;;  %v604_v4 = vrot.slane %v603_v1, 2 }
 0x191   : > { %v799_v5 = vadd.f32 %v798_v2, %v797_v0  ;;  %v605_v6 = vadd.f32 %v604_v4, %v603_v1  ;;  %v1014_v1 = vld [vmem:[%s1816_s10 + $0x70] sm:$0xff] }
 0x193   : > { %1390 = vrcp.f32 %v799_v5  ;;  %v606_v7 = vrot.slane %v605_v6, 1  ;;  %v1013_v5 = vld [vmem:[%s1816_s10 + $0x68] sm:$0xff] }
 0x195   : > { %v607_v8 = vadd.f32 %v606_v7, %v605_v6  ;;  %v477_v6 = vld [vmem:[%s1808_s2 + $0x6] sm:$0x3]  ;;  %v478_v7 = vld [vmem:[%s1808_s2 + $0x8] sm:$0x3] }
 0x197   : > { %1392 = vrcp.f32 %v607_v8  ;;  %v1012_v8 = vld [vmem:[%s1816_s10 + $0x60] sm:$0xff] }
 0x1a0   : > { %v1391_v18 = vpop.eup %1390 }
 0x1a1   : > { %v801_v20 = vmul.f32 %v1391_v18, %v1387_v56 }
 0x1a3   : > { %v805_v22 = vrot.slane %v801_v20, %v1616_v15  ;;  %v812_v27 = vrot.slane %v801_v20, %v1629_v23 }
 0x1a4   : > { %v1393_v24 = vpop.eup %1392 }
 0x1a5   : > { %v609_v25 = vmul.f32 %v1393_v24, %v1389_v59  ;;  %807 = vbcast.lane.b32.xlu1 %v805_v22, 256  ;;  %v479_v24 = vld [vmem:[%s1808_s2 + $0xa] sm:$0x3] }
 0x1a7   : > { %v613_v28 = vrot.slane %v609_v25, %v1616_v15  ;;  %v620_v32 = vrot.slane %v609_v25, %v1629_v23  ;;  %v627_v33 = vrot.slane %v609_v25, %v626_v29  ;;  %v634_v40 = vrot.slane %v609_v25, %v633_v34  ;;  %v1007_v29 = vld [vmem:[%s1816_s10 + $0x38] sm:$0xff] }
 0x1a8   : > { %v641_v41 = vrot.slane %v609_v25, %v640_v35  ;;  %v648_v46 = vrot.slane %v609_v25, %v647_v42  ;;  %v655_v47 = vrot.slane %v609_v25, %v654_v43  ;;  %v662_v49 = vrot.slane %v609_v25, %v661_v48  ;;  %v480_v25 = vld [vmem:[%s1808_s2 + $0xc] sm:$0x3]  ;;  %v1003_v42 = vld [vmem:[%s1816_s10 + $0x18] sm:$0xff] }
 0x1a9   : > { %814 = vbcast.lane.b32.xlu1 %v812_v27, 256  ;;  %615 = vbcast.lane.b32.xlu0 %v613_v28, 256  ;;  %v1008_v27 = vld [vmem:[%s1816_s10 + $0x40] sm:$0xff]  ;;  %v1001_v48 = vld [vmem:[%s1816_s10 + $0x8] sm:$0xff] }
 0x1ad   : > { %622 = vbcast.lane.b32.xlu1 %v620_v32, 256  ;;  %629 = vbcast.lane.b32.xlu0 %v627_v33, 256  ;;  %v1006_v33 = vld [vmem:[%s1816_s10 + $0x30] sm:$0xff] }
 0x1b1   : > { %636 = vbcast.lane.b32.xlu1 %v634_v40, 256  ;;  %643 = vbcast.lane.b32.xlu0 %v641_v41, 256  ;;  %v1004_v40 = vld [vmem:[%s1816_s10 + $0x20] sm:$0xff] }
 0x1b5   : > { %650 = vbcast.lane.b32.xlu1 %v648_v46, 256  ;;  %657 = vbcast.lane.b32.xlu0 %v655_v47, 256 }
 0x1b9   : > { %664 = vbcast.lane.b32.xlu1 %v662_v49, 256 }
 0x1bd   : > { %1115 = vrot.lane.b32.xlu1 %v1569_v17, %s1411_s16 }
 0x217   : > { %v808_v51 = vpop.permute.xlu1 %807 }
 0x218   : > { %v816_v52 = vmul.f32 %v808_v51, %v690_v50  ;;  %v1000_v50 = vld [vmem:[%s1816_s10] sm:$0xff] }
 0x21a   : > { %v818_v59 = vsel %vm674_vm5, %v816_v52, 0.0 }
 0x21b   : > { %v815_v53 = vpop.permute.xlu1 %814  ;;  %v616_v55 = vpop.permute.xlu0 %615 }
 0x21c   : > { %v817_v56 = vmul.f32 %v815_v53, %v691_v26  ;;  %v666_v61 = vmul.f32 %v616_v55, %v474_v54  ;;  %v1016_v53 = vld [vmem:[%s1817_s11] sm:$0x3] }
 0x21d   : > { %v1021_v54 = vrot.slane %v1016_v53, %v1616_v15 }
 0x21e   : > { %v819_v60 = vsel %vm674_vm5, %v817_v56, 0.0  ;;  %v675_v9 = vsel %vm674_vm5, %v666_v61, 0.0 }
 0x21f   : > { %v820_v62 = vadd.f32 %v819_v60, %v818_v59  ;;  %v623_v63 = vpop.permute.xlu1 %622  ;;  %v630_v0 = vpop.permute.xlu0 %629 }
 0x220   : > { %v667_v2 = vmul.f32 %v623_v63, %v475_v57  ;;  %v668_v4 = vmul.f32 %v630_v0, %v476_v58  ;;  %v1281_v57 = vld.sshfl [vmem:[%s1498_s20] sm:$0x33 pattern:$0x76325410] }
 0x221   : > { %1279 = vmatmul.mubr.msk.f32.vlgmr.msra.gmra.mxu0 %vm837_vm6, %v820_v62 }
 0x222   : > { %v676_v10 = vsel %vm674_vm5, %v667_v2, 0.0  ;;  %1045 = vmatpush1.msra.mxu0 %v1014_v1  ;;  %1092 = vmatprep.mubr.f32.mxu0 %v1408_v3  ;;  %v678_v18 = vsel %vm674_vm5, %v668_v4, 0.0  ;;  %v1025_v2 = vrot.slane %v1016_v53, %v1629_v23  ;;  %v1131_v23 = vld [vmem:[%s1818_s12 + $0x28] sm:$0xff] }
 0x223   : > { %v677_v12 = vadd.f32 %v676_v10, %v675_v9  ;;  %1046 = vmatprep.subr.mxu0 %v1013_v5  ;;  %v637_v13 = vpop.permute.xlu1 %636  ;;  %v644_v14 = vpop.permute.xlu0 %643 }
 0x224   : > { %v669_v19 = vmul.f32 %v637_v13, %v477_v6  ;;  %v670_v20 = vmul.f32 %v644_v14, %v478_v7  ;;  %1047 = vmatpush1.msra.mxu0 %v1012_v8  ;;  %v995_v6 = vcombine.high %v1281_v57, %v1281_v57  ;;  %v1130_v13 = vld [vmem:[%s1818_s12 + $0x20] sm:$0xff]  ;;  %v1129_v14 = vld [vmem:[%s1818_s12 + $0x18] sm:$0xff] }
 0x225   : > { %v679_v22 = vadd.f32 %v678_v18, %v677_v12  ;;  %1048 = vmatprep.subr.mxu0 %v1011_v11  ;;  %v1133_v11 = vld [vmem:[%s1818_s12 + $0x38] sm:$0xff]  ;;  %v1132_v12 = vld [vmem:[%s1818_s12 + $0x30] sm:$0xff] }
 0x226   : > { %v680_v28 = vsel %vm674_vm5, %v669_v19, 0.0  ;;  %1049 = vmatpush1.msra.mxu0 %v1010_v16  ;;  %v682_v34 = vsel %vm674_vm5, %v670_v20, 0.0  ;;  %v1128_v18 = vld [vmem:[%s1818_s12 + $0x10] sm:$0xff]  ;;  %v1127_v19 = vld [vmem:[%s1818_s12 + $0x8] sm:$0xff]  ;;  %v1126_v20 = vld [vmem:[%s1818_s12] sm:$0xff] }
 0x227   : > { %v681_v30 = vadd.f32 %v680_v28, %v679_v22  ;;  %1050 = vmatprep.subr.mxu0 %v1009_v21  ;;  %v651_v31 = vpop.permute.xlu1 %650  ;;  %v658_v32 = vpop.permute.xlu0 %657 }
 0x228   : > { %v671_v35 = vmul.f32 %v651_v31, %v479_v24  ;;  %v672_v36 = vmul.f32 %v658_v32, %v480_v25  ;;  %1051 = vmatpush1.msra.mxu0 %v1008_v27 }
 0x229   : > { %v683_v38 = vadd.f32 %v682_v34, %v681_v30  ;;  %1052 = vmatprep.subr.mxu0 %v1007_v29  ;;  %v1284_v30 = vld [vmem:[%s1819_s13] ss:$0 sm:$0xff] }
 0x22a   : > { %v684_v41 = vsel %vm674_vm5, %v671_v35, 0.0  ;;  %1053 = vmatpush1.msra.mxu0 %v1006_v33  ;;  %v686_v46 = vsel %vm674_vm5, %v672_v36, 0.0 }
 0x22b   : > { %v685_v43 = vadd.f32 %v684_v41, %v683_v38  ;;  %1054 = vmatprep.subr.mxu0 %v1005_v37  ;;  %v665_v44 = vpop.permute.xlu1 %664 }
 0x22c   : > { %v673_v47 = vmul.f32 %v665_v44, %v481_v39  ;;  %1055 = vmatpush1.msra.mxu0 %v1004_v40 }
 0x22d   : > { %v687_v49 = vadd.f32 %v686_v46, %v685_v43  ;;  %1056 = vmatprep.subr.mxu0 %v1003_v42 }
 0x22e   : > { %v688_v51 = vsel %vm674_vm5, %v673_v47, 0.0  ;;  %1057 = vmatpush1.msra.mxu0 %v1002_v45 }
 0x22f   : > { %v689_v26 = vadd.f32 %v688_v51, %v687_v49  ;;  %1058 = vmatprep.subr.mxu0 %v1001_v48  ;;  %v1116_v21 = vpop.permute.xlu1 %1115 }
 0x230   : > { %1059 = vmatpush1.msra.mxu0 %v1000_v50 }
 0x231   : > { %1280 = vmatmul.mubr.msk.f32.vlgmr.msra.gmra.mxu1 %vm837_vm6, %v689_v26  ;;  %1282 = vmatmul.mubr.msk.f32.vlgmr.msra.gmra.mxu0 %vm490_vm2, %v1569_v17 }
 0x232   : > { %1370 = vmatprep.mubr.msk.f32.mxu1 %vm1409_vm1, %v1408_v3  ;;  %1355 = vmatpush3.msra.mxu1 %v1133_v11 }
 0x233   : > { %1356 = vmatprep.subr.mxu1 %v1408_v3 }
 0x234   : > { %1357 = vmatpush3.msra.mxu1 %v1132_v12 }
 0x235   : > { %1358 = vmatprep.subr.mxu1 %v1408_v3 }
 0x236   : > { %1359 = vmatpush3.msra.mxu1 %v1131_v23 }
 0x237   : > { %1360 = vmatprep.subr.mxu1 %v1408_v3 }
 0x238   : > { %1361 = vmatpush3.msra.mxu1 %v1130_v13 }
 0x239   : > { %1362 = vmatprep.subr.mxu1 %v1408_v3 }
 0x23a   : > { %1363 = vmatpush3.msra.mxu1 %v1129_v14 }
 0x23b   : > { %1364 = vmatprep.subr.mxu1 %v1408_v3 }
 0x23c   : > { %1365 = vmatpush3.msra.mxu1 %v1128_v18 }
 0x23d   : > { %1366 = vmatprep.subr.mxu1 %v1408_v3 }
 0x23e   : > { %1367 = vmatpush3.msra.mxu1 %v1127_v19 }
 0x23f   : > { %1368 = vmatprep.subr.mxu1 %v1408_v3 }
 0x240   : > { %1369 = vmatpush3.msra.mxu1 %v1126_v20 }
 0x2e1   : > { %v907_v52 = vpop.f32.mrf.mxu0 }
 0x2e3   : > { %v909_v55 = vpop.f32.mrf.mxu0 }
 0x2f1   : > { %v981_v56 = vpop.f32.mrf.mxu1  ;;  %v1094_v58 = vpop.f32.mrf.mxu0 }
 0x2f2   : > { %v982_v59 = vadd.f32 %v981_v56, %v907_v52  ;;  %v1095_v60 = vadd.f32 %v1094_v58, %v1021_v54 }
 0x2f3   : > { %v983_v1 = vpop.f32.mrf.mxu1  ;;  %v1096_v4 = vpop.f32.mrf.mxu0 }
 0x2f4   : > { %v998_v61 = vadd.f32 %v1281_v57, %v982_v59  ;;  %v984_v5 = vadd.f32 %v983_v1, %v909_v55  ;;  %v1097_v15 = vadd.f32 %v1096_v4, %v1025_v2 }
 0x2f6   : > { %v1099_v62 = vadd.f32 %v1095_v60, %v998_v61  ;;  %v999_v8 = vadd.f32 %v995_v6, %v984_v5 }
 0x2f8   : > { %v1283_v63 = vmul.f32 -1.442695, %v1099_v62 }
 0x2fa   : > { %1394 = vpow2.f32 %v1283_v63 }
 0x307   : > { %v1395_v17 = vpop.eup %1394 }
 0x308   : > { %v1103_v0 = vadd.f32 1.0, %v1395_v17 }
 0x30a   : > { %1396 = vrcp.f32 %v1103_v0 }
 0x317   : > { %v1397_v7 = vpop.eup %1396 }
 0x318   : > { %v1106_v9 = vmul.f32 %v1397_v7, %v1097_v15  ;;  %v1109_v22 = vsub.f32 1.0, %v1397_v7  ;;  %v1118_v25 = vmul.f32 %v1397_v7, %v1116_v21 }
 0x31a   : > { %v1107_v10 = vadd.f32 %v1106_v9, %v999_v8 }
 0x31c   : > { %1398 = vtanh.f32 %v1107_v10 }
 0x329   : > { %v1399_v16 = vpop.eup %1398 }
 0x32a   : > { %1111 = vrot.lane.b32.xlu0 %v1399_v16, %s1411_s16 }
 0x39c   : > { %v1112_v24 = vpop.permute.xlu0 %1111 }
 0x39d   : > { %v1114_v27 = vmul.f32 %v1112_v24, %v1109_v22 }
 0x39f   : > { %v1119_v28 = vadd.f32 %v1118_v25, %v1114_v27 }
 0x3a1   : > { %1121 = vrot.lane.b32.xlu0 %v1119_v28, %s1411_s16 }
 0x413   : > { %v1122_v29 = vpop.permute.xlu0 %1121 }
 0x414   : > { %1125 = vst.msk [vmem:[#allocation2] sm:$0x3] %vm1124_vm7, %v1122_v29  ;;  %1371 = vmatmul.mubr.msk.f32.vlgmr.msra.gmra.mxu1 %vm490_vm2, %v1122_v29 }
 0x4d4   : > { %v1209_v3 = vpop.f32.mrf.mxu1 }
 0x4d5   : > { %v1210_v31 = vadd.f32 %v1284_v30, %v1209_v3 }
 0x4d6   : > { %v1372_v32 = vpop.f32.mrf.mxu1 }
 0x4d7   : > { %1214 = vst.msk [vmem:[%s1503_s23] sm:$0x3] %vm1213_vm8, %v1210_v31 }
 0x4d8 PF: > { %s24_s29 = sadd.s32 1, %s1406_s29  }
 0x4d9   : > { %p21_p5 = scmp.ge.s32.totalorder %s24_s29, 7  }
 0x4db   :  { %23 = sbr.rel (!%p21_p5) target bundleno = 1 (0x1), region = 110 }

</bundles_post_ra>
